<compile_context>
chip_gen: v7x
topology: tpu7x:2x2x1
jax: 0.10.0
libtpu: 0.0.40
codegen_flags: <defaults>
</compile_context>

<pallas_src>
import jax
import jax.numpy as jnp
from jax.experimental import pallas as pl
from jax.experimental.pallas import tpu as pltpu

HIDDEN_DIM = 32
LN_EPS = 1e-5  # PyTorch LayerNorm default


# ---------------------------------------------------------------------------
# Fused Pallas kernel (one batch-block per grid step)
# ---------------------------------------------------------------------------
def _temporal_attention_kernel(x_ref, p_ref, ctx_ref, wts_ref):
    x = x_ref[...]                                   # (Bt, S, H) f32
    Bt, S, H = x.shape

    # Packed parameter slab (H + 4*8, H); every param starts on an 8-sublane
    # boundary -> static slices, no relayout.
    w1t  = p_ref[0:H, :]                             # (H, H) Linear1 weight^T
    b1   = p_ref[H + 0:H + 1, :]                     # (1, H)
    ln_g = p_ref[H + 8:H + 9, :]                     # (1, H)
    ln_b = p_ref[H + 16:H + 17, :]                   # (1, H)
    w2   = p_ref[H + 24:H + 25, :]                   # (1, H) Linear2 weight (out=1)

    # Linear1 as ONE 2-D MXU contraction with M = Bt*S (free relabel, S%8==0).
    x2 = x.reshape(Bt * S, H)
    h = jnp.dot(x2, w1t, preferred_element_type=jnp.float32) + b1   # (Bt*S, H)

    # LayerNorm (biased variance, matches PyTorch) + Tanh; single-pass stats.
    inv_h = 1.0 / H
    s1 = jnp.sum(h, axis=-1, keepdims=True)
    s2 = jnp.sum(h * h, axis=-1, keepdims=True)
    mean = s1 * inv_h
    var = jnp.maximum(s2 * inv_h - mean * mean, 0.0)
    t = jnp.tanh((h - mean) * jax.lax.rsqrt(var + LN_EPS) * ln_g + ln_b)

    # Linear2 (H -> 1): elementwise mul + lane reduce (VPU/XLU, skip the MXU).
    # b2 intentionally dropped: softmax is shift-invariant, so it never affects
    # the returned weights or context.
    t3 = t.reshape(Bt, S, H)
    scores = jnp.sum(t3 * w2, axis=-1)               # (Bt, S)

    # Softmax over the sequence axis (dim=1), numerically stable.
    m = jnp.max(scores, axis=-1, keepdims=True)
    e = jnp.exp(scores - m)
    weights = e / jnp.sum(e, axis=-1, keepdims=True)  # exact divide (see header)

    # context = bmm(weights[:,None,:], x)[:,0,:] as mul + sublane reduce.
    context = jnp.sum(weights[:, :, None] * x, axis=1)  # (Bt, H)

    wts_ref[...] = weights.astype(wts_ref.dtype)
    ctx_ref[...] = context.astype(ctx_ref.dtype)


# ---------------------------------------------------------------------------
# Parameter packing (done ONCE at init time, not per forward call)
# ---------------------------------------------------------------------------
def pack_params(params, H):
    """Pack all parameters into one (H + 32, H) f32 slab (single resident DMA).

    Vector params are broadcast to full 8-row sublane tiles so in-kernel
    single-row slices are tile-aligned.
    """
    assert H % 8 == 0, "H must be a multiple of 8 for aligned slab rows"

    def row8(v):
        return jnp.broadcast_to(v.reshape(1, H).astype(jnp.float32), (8, H))

    return jnp.concatenate(
        [
            params['w1'].T.astype(jnp.float32),   # rows [0, H)
            row8(params['b1']),                   # rows [H,    H+8)
            row8(params['ln_g']),                 # rows [H+8,  H+16)
            row8(params['ln_b']),                 # rows [H+16, H+24)
            row8(params['w2'].reshape(H)),        # rows [H+24, H+32)
        ],
        axis=0,
    )


def _pick_block_b(B, S, H):
    """Batch tile: 8-sublane aligned, f32 x-block capped at ~2 MiB (v7x-safe:
    h/t intermediates each duplicate the block and inputs are double-buffered),
    and <= B//2 when possible so the 'parallel' batch axis feeds both v7x TCs."""
    if B % 8 != 0:
        return B                                   # tiny / unaligned B: one block
    row_bytes = S * H * 4
    cap = max(8, (2 << 20) // max(row_bytes, 1))   # rows allowed by VMEM budget
    target = B // 2 if (B >= 16 and (B // 2) % 8 == 0) else B
    bb = 8
    while bb * 2 <= min(target, cap) and B % (bb * 2) == 0:
        bb *= 2
    return bb


def temporal_attention(x, slab, *, block_b=None):
    """Pallas forward of TemporalAttention.

    Args:
      x:    (B, S, H) activations.
      slab: (H + 32, H) packed parameter slab from pack_params (built once).
    Returns:
      (context (B, H), weights (B, S)).
    """
    B, S, H = x.shape
    if block_b is None:
        block_b = _pick_block_b(B, S, H)
    assert B % block_b == 0
    grid = (B // block_b,)

    grid_spec = pltpu.PrefetchScalarGridSpec(
        num_scalar_prefetch=0,
        grid=grid,
        in_specs=[
            pl.BlockSpec((block_b, S, H), lambda i: (i, 0, 0)),
            # Constant index map: the param slab is DMA'd once and stays resident.
            pl.BlockSpec(slab.shape, lambda i: (0, 0)),
        ],
        out_specs=(
            pl.BlockSpec((block_b, H), lambda i: (i, 0)),
            pl.BlockSpec((block_b, S), lambda i: (i, 0)),
        ),
    )

    context, weights = pl.pallas_call(
        _temporal_attention_kernel,
        out_shape=(
            jax.ShapeDtypeStruct((B, H), jnp.float32),
            jax.ShapeDtypeStruct((B, S), jnp.float32),
        ),
        grid_spec=grid_spec,
        compiler_params=pltpu.CompilerParams(
            # Batch blocks are independent -> shard across v7x's 2 TensorCores.
            dimension_semantics=("parallel",),
        ),
    )(x.astype(jnp.float32), slab)
    return context, weights


# ---------------------------------------------------------------------------
# Pure-JAX reference (written directly from the PyTorch spec, incl. b2)
# ---------------------------------------------------------------------------
def temporal_attention_ref(x, params):
    h = jnp.einsum('bsh,gh->bsg', x, params['w1']) + params['b1']
    mean = jnp.mean(h, axis=-1, keepdims=True)
    var = jnp.mean((h - mean) ** 2, axis=-1, keepdims=True)
    hn = (h - mean) * jax.lax.rsqrt(var + LN_EPS) * params['ln_g'] + params['ln_b']
    t = jnp.tanh(hn)
    scores = jnp.einsum('bsh,oh->bso', t, params['w2'])[..., 0] + params['b2'][0]
    weights = jax.nn.softmax(scores, axis=1)
    context = jnp.einsum('bs,bsh->bh', weights, x)
    return context, weights


# ---------------------------------------------------------------------------
# Deterministic parameter init (shapes match nn.Linear / nn.LayerNorm)
# ---------------------------------------------------------------------------
def init_params(key, H):
    k1, k2, k3, k4 = jax.random.split(key, 4)
    s1 = 1.0 / float(H) ** 0.5
    return dict(
        w1=jax.random.normal(k1, (H, H), jnp.float32) * s1,   # Linear(H,H).weight
        b1=jax.random.normal(k2, (H,), jnp.float32) * s1,     # Linear(H,H).bias
        ln_g=jnp.ones((H,), jnp.float32),                     # LayerNorm.weight
        ln_b=jnp.zeros((H,), jnp.float32),                    # LayerNorm.bias
        w2=jax.random.normal(k3, (1, H), jnp.float32) * s1,   # Linear(H,1).weight
        b2=jax.random.normal(k4, (1,), jnp.float32) * s1,     # Linear(H,1).bias
    )


if __name__ == "__main__":
    key = jax.random.PRNGKey(0)
    kx, kp = jax.random.split(key)

    B, S, H = 16, 16, HIDDEN_DIM          # 2 batch blocks of 8 -> grid=(2,)
    x = jax.random.normal(kx, (B, S, H), jnp.float32)
    params = init_params(kp, H)
    slab = pack_params(params, H)         # packed ONCE, outside the hot path

    fwd = jax.jit(temporal_attention)
    context, weights = fwd(x, slab)
    context = jax.block_until_ready(context)
    weights = jax.block_until_ready(weights)

    ctx_ref, wts_ref = temporal_attention_ref(x, params)

    assert context.shape == (B, H), context.shape
    assert weights.shape == (B, S), weights.shape
    assert jnp.allclose(context, ctx_ref, atol=1e-4, rtol=1e-4), \
        float(jnp.max(jnp.abs(context - ctx_ref)))
    assert jnp.allclose(weights, wts_ref, atol=1e-4, rtol=1e-4), \
        float(jnp.max(jnp.abs(weights - wts_ref)))
    # weights should sum to 1 along the sequence axis
    assert jnp.allclose(jnp.sum(weights, axis=1), jnp.ones((B,)), atol=1e-5)

    print("KERNEL_OK")
</pallas_src>

<mosaic_0001>
module attributes {stable_mosaic.version = 11 : i64} {
  func.func @_temporal_attention_kernel(%arg0: i32, %arg1: memref<8x16x32xf32, #tpu.memory_space<vmem>>, %arg2: memref<64x32xf32, #tpu.memory_space<vmem>>, %arg3: memref<8x32xf32, #tpu.memory_space<vmem>>, %arg4: memref<8x16xf32, #tpu.memory_space<vmem>>) attributes {dimension_semantics = [#tpu.dimension_semantics<parallel>], iteration_bounds = array<i64: 2>, scalar_prefetch = 0 : i64, scratch_operands = 0 : i64, tpu.core_type = #tpu.core_type<tc>, window_params = [{transform_indices = @transform_0, window_bounds = array<i64: 8, 16, 32>}, {pipeline_mode = #tpu.pipeline_mode<synchronous>, transform_indices = @transform_1, window_bounds = array<i64: 64, 32>}, {transform_indices = @transform_2, window_bounds = array<i64: 8, 32>}, {transform_indices = @transform_3, window_bounds = array<i64: 8, 16>}]} {
    %c0 = arith.constant 0 : index
    %c0_0 = arith.constant 0 : index
    %c0_1 = arith.constant 0 : index
    %0 = vector.load %arg1[%c0, %c0_0, %c0_1] : memref<8x16x32xf32, #tpu.memory_space<vmem>>, vector<8x16x32xf32>
    %c0_2 = arith.constant 0 : index
    %c0_3 = arith.constant 0 : index
    %1 = vector.load %arg2[%c0_2, %c0_3] : memref<64x32xf32, #tpu.memory_space<vmem>>, vector<32x32xf32>
    %c32 = arith.constant 32 : index
    %c0_4 = arith.constant 0 : index
    %2 = vector.load %arg2[%c32, %c0_4] : memref<64x32xf32, #tpu.memory_space<vmem>>, vector<1x32xf32>
    %c40 = arith.constant 40 : index
    %c0_5 = arith.constant 0 : index
    %3 = vector.load %arg2[%c40, %c0_5] : memref<64x32xf32, #tpu.memory_space<vmem>>, vector<1x32xf32>
    %c48 = arith.constant 48 : index
    %c0_6 = arith.constant 0 : index
    %4 = vector.load %arg2[%c48, %c0_6] : memref<64x32xf32, #tpu.memory_space<vmem>>, vector<1x32xf32>
    %c56 = arith.constant 56 : index
    %c0_7 = arith.constant 0 : index
    %5 = vector.load %arg2[%c56, %c0_7] : memref<64x32xf32, #tpu.memory_space<vmem>>, vector<1x32xf32>
    %6 = vector.shape_cast %0 : vector<8x16x32xf32> to vector<128x32xf32>
    %cst = arith.constant dense<0.000000e+00> : vector<128x32xf32>
    %7 = tpu.matmul %6, %1, %cst {dimension_numbers = #tpu.dot_dimension_numbers<[1], [0], [0], [1], [0, 0, 1, 1], [], []>} : vector<128x32xf32>, vector<32x32xf32>, vector<128x32xf32> -> vector<128x32xf32>
    %8 = vector.broadcast %2 : vector<1x32xf32> to vector<128x32xf32>
    %9 = arith.addf %7, %8 : vector<128x32xf32>
    %cst_8 = arith.constant dense<0.000000e+00> : vector<128xf32>
    %10 = vector.multi_reduction <add>, %9, %cst_8 [1] : vector<128x32xf32> to vector<128xf32>
    %11 = vector.shape_cast %10 : vector<128xf32> to vector<128x1xf32>
    %12 = arith.mulf %9, %9 : vector<128x32xf32>
    %cst_9 = arith.constant dense<0.000000e+00> : vector<128xf32>
    %13 = vector.multi_reduction <add>, %12, %cst_9 [1] : vector<128x32xf32> to vector<128xf32>
    %14 = vector.shape_cast %13 : vector<128xf32> to vector<128x1xf32>
    %cst_10 = arith.constant 3.125000e-02 : f32
    %15 = vector.broadcast %cst_10 : f32 to vector<128x1xf32>
    %16 = arith.mulf %11, %15 : vector<128x1xf32>
    %cst_11 = arith.constant 3.125000e-02 : f32
    %17 = vector.broadcast %cst_11 : f32 to vector<128x1xf32>
    %18 = arith.mulf %14, %17 : vector<128x1xf32>
    %19 = arith.mulf %16, %16 : vector<128x1xf32>
    %20 = arith.subf %18, %19 : vector<128x1xf32>
    %cst_12 = arith.constant 0.000000e+00 : f32
    %21 = vector.broadcast %cst_12 : f32 to vector<128x1xf32>
    %22 = arith.maximumf %20, %21 : vector<128x1xf32>
    %23 = vector.broadcast %16 : vector<128x1xf32> to vector<128x32xf32>
    %24 = arith.subf %9, %23 : vector<128x32xf32>
    %cst_13 = arith.constant 9.99999974E-6 : f32
    %25 = vector.broadcast %cst_13 : f32 to vector<128x1xf32>
    %26 = arith.addf %22, %25 : vector<128x1xf32>
    %27 = math.rsqrt %26 : vector<128x1xf32>
    %28 = vector.broadcast %27 : vector<128x1xf32> to vector<128x32xf32>
    %29 = arith.mulf %24, %28 : vector<128x32xf32>
    %30 = vector.broadcast %3 : vector<1x32xf32> to vector<128x32xf32>
    %31 = arith.mulf %29, %30 : vector<128x32xf32>
    %32 = vector.broadcast %4 : vector<1x32xf32> to vector<128x32xf32>
    %33 = arith.addf %31, %32 : vector<128x32xf32>
    %34 = math.tanh %33 : vector<128x32xf32>
    %35 = vector.shape_cast %34 : vector<128x32xf32> to vector<8x16x32xf32>
    %36 = vector.shape_cast %5 : vector<1x32xf32> to vector<1x1x32xf32>
    %37 = vector.broadcast %36 : vector<1x1x32xf32> to vector<8x16x32xf32>
    %38 = arith.mulf %35, %37 : vector<8x16x32xf32>
    %cst_14 = arith.constant dense<0.000000e+00> : vector<8x16xf32>
    %39 = vector.multi_reduction <add>, %38, %cst_14 [2] : vector<8x16x32xf32> to vector<8x16xf32>
    %cst_15 = arith.constant dense<0xFF800000> : vector<8xf32>
    %40 = vector.multi_reduction <maximumf>, %39, %cst_15 [1] : vector<8x16xf32> to vector<8xf32>
    %41 = vector.shape_cast %40 : vector<8xf32> to vector<8x1xf32>
    %42 = vector.broadcast %41 : vector<8x1xf32> to vector<8x16xf32>
    %43 = arith.subf %39, %42 : vector<8x16xf32>
    %44 = math.exp %43 : vector<8x16xf32>
    %cst_16 = arith.constant dense<0.000000e+00> : vector<8xf32>
    %45 = vector.multi_reduction <add>, %44, %cst_16 [1] : vector<8x16xf32> to vector<8xf32>
    %46 = vector.shape_cast %45 : vector<8xf32> to vector<8x1xf32>
    %47 = vector.broadcast %46 : vector<8x1xf32> to vector<8x16xf32>
    %48 = arith.divf %44, %47 : vector<8x16xf32>
    %49 = vector.shape_cast %48 : vector<8x16xf32> to vector<8x16x1xf32>
    %50 = vector.broadcast %49 : vector<8x16x1xf32> to vector<8x16x32xf32>
    %51 = arith.mulf %50, %0 : vector<8x16x32xf32>
    %cst_17 = arith.constant dense<0.000000e+00> : vector<8x32xf32>
    %52 = vector.multi_reduction <add>, %51, %cst_17 [1] : vector<8x16x32xf32> to vector<8x32xf32>
    %c0_18 = arith.constant 0 : index
    %c0_19 = arith.constant 0 : index
    %53 = vector.load %arg4[%c0_18, %c0_19] : memref<8x16xf32, #tpu.memory_space<vmem>>, vector<8x16xf32>
    tpu.vector_store %arg4[%c0_18, %c0_19], %48 {strides = array<i32>} : memref<8x16xf32, #tpu.memory_space<vmem>>, vector<8x16xf32>,
    %c0_20 = arith.constant 0 : index
    %c0_21 = arith.constant 0 : index
    %54 = vector.load %arg3[%c0_20, %c0_21] : memref<8x32xf32, #tpu.memory_space<vmem>>, vector<8x32xf32>
    tpu.vector_store %arg3[%c0_20, %c0_21], %52 {strides = array<i32>} : memref<8x32xf32, #tpu.memory_space<vmem>>, vector<8x32xf32>,
    return
  }
  func.func @transform_0(%arg0: i32) -> (i32, i32, i32) {
    %c0_i32 = arith.constant 0 : i32
    %c0_i32_0 = arith.constant 0 : i32
    %c0_i32_1 = arith.constant 0 : i32
    return %arg0, %c0_i32, %c0_i32_0 : i32, i32, i32
  }
  func.func @transform_1(%arg0: i32) -> (i32, i32) {
    %c0_i32 = arith.constant 0 : i32
    %c0_i32_0 = arith.constant 0 : i32
    %c0_i32_1 = arith.constant 0 : i32
    return %c0_i32, %c0_i32_0 : i32, i32
  }
  func.func @transform_2(%arg0: i32) -> (i32, i32) {
    %c0_i32 = arith.constant 0 : i32
    %c0_i32_0 = arith.constant 0 : i32
    return %arg0, %c0_i32 : i32, i32
  }
  func.func @transform_3(%arg0: i32) -> (i32, i32) {
    %c0_i32 = arith.constant 0 : i32
    %c0_i32_0 = arith.constant 0 : i32
    return %arg0, %c0_i32 : i32, i32
  }
}

</mosaic_0001>

<bundles_post_ra>
// kernel: temporal_attention.1
= control target key start
LH: loop header
LB: loop body
LE: loop exit
PB: predicated region body
PF: predicated region fallthrough
CT: control target
= control target key end

     0   :  { %9 = vsyncpa [#allocation3], 0  ;;  %s2983_s0 = inlined_call_operand.hbm [shape: f32[16,16,32], index: 0, kind: input, shape index: {}]   ;;  %s2984_s1 = inlined_call_operand.vmem [shape: f32[64,32], index: 1, kind: input, shape index: {}]   ;;  %s2985_s2 = inlined_call_operand.hbm [shape: f32[16,32], index: 2, kind: output, shape index: {0}]   ;;  %s2986_s3 = inlined_call_operand.hbm [shape: f32[16,16], index: 3, kind: output, shape index: {1}]  }
   0x1   :  { %11 = vsyncpa [#allocation3 + $0x1], 0 }
   0x2   :  { %12 = vsyncpa [#allocation4], 0 }
   0x3   :  { %14 = vsyncpa [#allocation4 + $0x1], 0 }
   0x4   :  { %15 = vsyncpa [#allocation7], 0 }
   0x5   :  { %17 = vsyncpa [#allocation7 + $0x1], 0  ;;  %s2059_s12 = smov 0   ;;  %s2061_s13 = smov 0  }
   0x6   :  { %s2063_s14 = smov 0   ;;  %s2065_s15 = smov 0  }
   0x7 LB: > { %s2080_s16 = sadd.s32 4294967295, %s2031_s15   ;;  %s1616_s17 = sadd.s32 4294967294, %s2031_s15   ;;  %s2031_s15 = sphi %s2065_s15, %s2999_s15   ;;  %s2027_s14 = sphi %s2063_s14, %s2998_s14   ;;  %s2023_s13 = sphi %s2061_s13, %s2997_s13   ;;  %s2019_s12 = sphi %s2059_s12, %s2996_s12  }
   0x8   : > { %s2084_s18 = sadd.s32 1, %s2031_s15   ;;  %s30_s19 = sadd.s32 1, %s2027_s14 }
   0x9   : > { %s27_s20 = ssub.s32 %s2031_s15, %s2084_s18  ;;  %p37_p0 = scmp.ne.s32.totalorder %s2027_s14, %s2023_s13 }
   0xa   : > { %p28_p1 = scmp.eq.s32.totalorder %s27_s20, 0  ;;  %p38_p2 = scmp.eq.s32.totalorder %s2031_s15, 0 }
   0xb   : > { %p43_p3 = scmp.ne.s32.totalorder %s2023_s13, %s2019_s12  ;;  %p44_p4 = scmp.eq.s32.totalorder %s2080_s16, 0 }
   0xc   : > { %s2096_s21 = scalar_select %p28_p1, %s2027_s14, %s30_s19  }
   0xd   : > { %p2098_p5 = por %p38_p2, %p37_p0  ;;  %p2102_p6 = por %p44_p4, %p43_p3 }
   0xe   : > { %p88_p7 = scmp.eq.s32.totalorder %s2080_s16, 1  ;;  %p94_p8 = scmp.eq.s32.totalorder %s1616_s17, 1 }
   0xf   : > { %p1736_p10 = scmp.lt.s32.totalorder %s2031_s15, 2  ;;  %s143_s26 = sand.u32 1, %s2027_s14  }
  0x10   : > { %p2109_p11 = por %p88_p7, %p37_p0  ;;  %p2113_p12 = por %p94_p8, %p43_p3 }
  0x11   : > { %s1654_s27 = sshll.u32 %s2031_s15, 11  ;;  %s1619_s28 = sshll.u32 %s143_s26, 7 }
  0x12   : > { %s2990_s24 = scalar_select %p2109_p11, 1, 0 }
  0x13   : > { %s2991_s25 = scalar_select %p2113_p12, 1, 0 }
  0x14   : > { %s2122_s4 = scalar_lea.hbm %s2983_s0, %s1654_s27  ;;  %s147_s5 = scalar_lea.vmem [#allocation2], %s1619_s28 }
  0x15   : > { %s155_s6 = sshll.u32 %s147_s5, 4  ;;  %p2126_p13 = pnand %p1736_p10, %p2098_p5  ;;  %s2130_s6 = int_to_ptr.vmem [resolvable:$true] %s155_s6 }
  0x16   : > { %s2132_s8 = scalar_lea.sflag [#allocation3], %s143_s26  ;;  %s1903_s9 = scalar_lea.hbm %s2122_s4, 2048 }
  0x17   : > { %p1904_p0 = scmp.ne.s32.totalorder %s2122_s4, %s1903_s9  ;;  %p1905_p1 = pneg %p2126_p13 }
  0x18   : > { %s1908_s17 = scalar_lea.hbm %s2983_s0, 4096  ;;  %p1909_p4 = scmp.lt.u32.totalorder %s2122_s4, %s2983_s0 }
  0x19   : > { %p1906_p2 = pnand %p1905_p1, %p1904_p0  ;;  %p1910_p5 = scmp.lt.u32.totalorder %s1908_s17, %s1903_s9 }
  0x1a   : > { %p1912_p8 = scmp.lt.u32.totalorder %s1903_s9, %s2122_s4 }
  0x1b   : > { %p1907_p3 = pneg %p1906_p2  ;;  %p1911_p7 = por %p1910_p5, %p1909_p4 }
  0x1d   : > { %p1913_p10 = por %p1912_p8, %p1911_p7 }
  0x1f   : > { %p1914_p9 = pnand %p1913_p10, %p1907_p3 }
  0x21   : > { %1917 = shalt.err (!%p1914_p9)
}
  0x22   : > { %s1918_s22 = scalar_lea.vmem %s2130_s6, 2048  ;;  %s2033_s26 = smov [#allocation2]  }
  0x23   : > { %p1919_p0 = scmp.ne.s32.totalorder %s2130_s6, %s1918_s22  ;;  %s1923_s27 = sshll.u32 %s2033_s26, 4  ;;  %s1924_s27 = int_to_ptr.vmem [resolvable:$false] %s1923_s27 }
  0x24   : > { %s1925_s28 = scalar_lea.vmem %s1924_s27, 4096  ;;  %p1926_p11 = scmp.lt.s32.totalorder %s2130_s6, %s1924_s27 }
  0x25   : > { %p1921_p2 = pnand %p1919_p0, %p1905_p1  ;;  %p1927_p4 = scmp.lt.s32.totalorder %s1925_s28, %s1918_s22 }
  0x27   : > { %p1922_p12 = pneg %p1921_p2  ;;  %p1928_p5 = por %p1927_p4, %p1926_p11 }
  0x29   : > { %p1929_p7 = pnand %p1928_p5, %p1922_p12 }
  0x2b   : > { %1932 = shalt.err (!%p1929_p7)
}
  0x2c   : > { %s2034_s29 = smov 128   ;;  %s2035_s30 = smov 8  }
  0x2d   : > { %1728 = dma.hbm_to_vmem [thread:$0]  (!%p2126_p13), %s2122_s4, 2048, %s2130_s6, %s2132_s8, %s2034_s29, %s2034_s29, %s2035_s30  }
  0x2e   : > { %p1623_p9 = scmp.ge.s32.totalorder %s2031_s15, 1  ;;  %p163_p1 = scmp.lt.s32.totalorder %s2031_s15, 3 }
  0x30   : > { %p164_p3 = pnand %p1623_p9, %p163_p1 }
  0x31   : > { %s2163_s5 = sand.u32 (!%p164_p3), 1, %s2023_s13  }
  0x32   : > { %167 = sbr.rel (%p164_p3) target bundleno = 1392 (0x570), region = 28  ;;  %s1624_s9 = sshll.u32 (!%p164_p3), %s2163_s5, 7 }
  0x33   : > { %s170_s10 = scalar_lea.sflag (!%p164_p3), [#allocation3], %s2163_s5  ;;  %s2167_s11 = scalar_lea.vmem (!%p164_p3), [#allocation2], %s1624_s9 }
  0x39   : > { %2006 = dma.done.wait (%p2102_p6), %s170_s10, 2048  }
  0x3a   : > { %2008 = vsyncadd (%p2102_p6), %s170_s10, 4294965248  ;;  %vm230_vm0 = vcmask 261120   ;;  %v218_v0 = vld [vmem:[%s2984_s1] sm:$0xff]  ;;  %v219_v1 = vld [vmem:[%s2984_s1 + $0x8] sm:$0xff]  ;;  %vm831_vm1 = vcmask 130112   ;;  %vm896_vm2 = vcmask 1041409  }
  0x3b   : > { %v220_v2 = vld [vmem:[%s2984_s1 + $0x10] sm:$0xff]  ;;  %v1707_v3 = vpack.c.bf16 %v219_v1, %v218_v0  ;;  %v221_v4 = vld [vmem:[%s2984_s1 + $0x18] sm:$0xff]  ;;  %v202_v5 = vld [vmem:[%s2167_s11] sm:$0xff]  ;;  %vm898_vm3 = vcmask 1042434   ;;  %vm900_vm4 = vcmask 1043459   ;;  %vm902_vm5 = vcmask 1044484  }
  0x3c   : > { %v210_v6 = vld [vmem:[%s2167_s11 + $0x40] sm:$0xff]  ;;  %v1711_v7 = vpack.c.bf16 %v221_v4, %v220_v2  ;;  %1683 = vmatprep.mubr.msk.f32.mxu0 %vm230_vm0, %v202_v5  ;;  %v203_v8 = vld [vmem:[%s2167_s11 + $0x8] sm:$0xff]  ;;  %v204_v10 = vld [vmem:[%s2167_s11 + $0x10] sm:$0xff]  ;;  %vm904_vm6 = vcmask 1045509   ;;  %vm906_vm7 = vcmask 1046534   ;;  %vm908_vm8 = vcmask 1047559  }
  0x3d   : > { %1695 = vmatprep.mubr.msk.f32.mxu1 %vm230_vm0, %v210_v6  ;;  %1708 = vmatprep.subr.bf16.mxu0 %v1707_v3  ;;  %v211_v9 = vld [vmem:[%s2167_s11 + $0x48] sm:$0xff]  ;;  %v212_v11 = vld [vmem:[%s2167_s11 + $0x50] sm:$0xff]  ;;  %v205_v12 = vld [vmem:[%s2167_s11 + $0x18] sm:$0xff]  ;;  %vm911_vm9 = vcmask 130048   ;;  %s1625_s4 = sshll.u32 %s2163_s5, 3  ;;  %s1649_s6 = sshll.u32 %s2080_s16, 7 }
  0x3e   : > { %1715 = vmatprep.subr.bf16.mxu1 %v1707_v3  ;;  %1710 = vmatpush3.bf16.msra.mxu0 %v1707_v3  ;;  %v213_v13 = vld [vmem:[%s2167_s11 + $0x58] sm:$0xff]  ;;  %v206_v14 = vld [vmem:[%s2167_s11 + $0x20] sm:$0xff]  ;;  %v207_v16 = vld [vmem:[%s2167_s11 + $0x28] sm:$0xff]  ;;  %s200_s7 = scalar_lea.vmem [#allocation6], %s1625_s4  ;;  %s2892_s19 = scalar_lea.hbm %s2986_s3, %s1649_s6 }
  0x3f   : > { %1717 = vmatpush3.bf16.msra.mxu1 %v1707_v3  ;;  %1712 = vmatprep.subr.bf16.mxu0 %v1711_v7  ;;  %v214_v15 = vld [vmem:[%s2167_s11 + $0x60] sm:$0xff]  ;;  %v215_v17 = vld [vmem:[%s2167_s11 + $0x68] sm:$0xff]  ;;  %v208_v18 = vld [vmem:[%s2167_s11 + $0x30] sm:$0xff]  ;;  %s1514_s8 = sshll.u32 %s200_s7, 4  ;;  %s1488_s20 = scalar_lea.sflag [#allocation7], %s2163_s5  ;;  %s2894_s8 = int_to_ptr.vmem [resolvable:$true] %s1514_s8 }
  0x40   : > { %1716 = vmatprep.subr.bf16.mxu1 %v1711_v7  ;;  %v216_v19 = vld [vmem:[%s2167_s11 + $0x70] sm:$0xff]  ;;  %v209_v20 = vld [vmem:[%s2167_s11 + $0x38] sm:$0xff]  ;;  %v2220_v22 = vld [vmem:[%s2984_s1 + $0x20] ss:$0 sm:$0xff]  ;;  %s1933_s23 = scalar_lea.vmem %s2894_s8, 128  ;;  %p2993_p11 = scmp.ne.s32.totalorder %s2990_s24, 0 }
  0x41   : > { %v217_v21 = vld [vmem:[%s2167_s11 + $0x78] sm:$0xff]  ;;  %p1934_p6 = scmp.ne.s32.totalorder %s2894_s8, %s1933_s23  ;;  %s2037_s22 = smov [#allocation6]  }
  0x42   : > { %1714 = vmatpush3.bf16.msra.mxu0 %v1711_v7  ;;  %s1937_s26 = sshll.u32 %s2037_s22, 4  ;;  %s1938_s26 = int_to_ptr.vmem [resolvable:$false] %s1937_s26 }
  0x43   : > { %1718 = vmatpush3.bf16.msra.mxu1 %v1711_v7  ;;  %p1935_p12 = pnand %p1934_p6, %p2993_p11  ;;  %s1939_s27 = scalar_lea.vmem %s1938_s26, 256 }
  0x44   : > { %p1940_p8 = scmp.lt.s32.totalorder %s2894_s8, %s1938_s26  ;;  %p1941_p10 = scmp.lt.s32.totalorder %s1939_s27, %s1933_s23 }
  0x45   : > { %1684 = vmatmul.mubr.msk.f32.vlgmr.msra.gmra.mrb[0].mxu0 %vm230_vm0, %v203_v8  ;;  %p1936_p13 = pneg %p1935_p12 }
  0x46   : > { %1696 = vmatmul.mubr.msk.f32.vlgmr.msra.gmra.mrb[0].mxu1 %vm230_vm0, %v211_v9  ;;  %1686 = vmatprep.mubr.msk.f32.mxu0 %vm230_vm0, %v204_v10  ;;  %p1942_p0 = por %p1941_p10, %p1940_p8 }
  0x47   : > { %1698 = vmatprep.mubr.msk.f32.mxu1 %vm230_vm0, %v212_v11 }
  0x48   : > { %p1943_p2 = pnand %p1942_p0, %p1936_p13 }
  0x49   : > { %1687 = vmatmul.mubr.msk.f32.gmra.mrb[2].mxu0 %vm230_vm0, %v205_v12 }
  0x4a   : > { %1699 = vmatmul.mubr.msk.f32.gmra.mrb[2].mxu1 %vm230_vm0, %v213_v13  ;;  %1689 = vmatprep.mubr.msk.f32.mxu0 %vm230_vm0, %v206_v14 }
  0x4b   : > { %1701 = vmatprep.mubr.msk.f32.mxu1 %vm230_vm0, %v214_v15 }
  0x4d   : > { %1690 = vmatmul.mubr.msk.f32.gmra.mrb[4].mxu0 %vm230_vm0, %v207_v16 }
  0x4e   : > { %1702 = vmatmul.mubr.msk.f32.gmra.mrb[4].mxu1 %vm230_vm0, %v215_v17  ;;  %1692 = vmatprep.mubr.msk.f32.mxu0 %vm230_vm0, %v208_v18 }
  0x4f   : > { %1704 = vmatprep.mubr.msk.f32.mxu1 %vm230_vm0, %v216_v19 }
  0x51   : > { %1693 = vmatmul.mubr.msk.f32.gmra.mrb[6].mxu0 %vm230_vm0, %v209_v20 }
  0x52   : > { %1705 = vmatmul.mubr.msk.f32.gmra.mrb[6].mxu1 %vm230_vm0, %v217_v21 }
 0x118   : > { %v1685_v23 = vpop.f32.mrb[0].mxu0 }
 0x119   : > { %v1697_v24 = vpop.f32.mrb[0].mxu1  ;;  %v2223_v25 = vadd.f32 %v1685_v23, %v2220_v22  ;;  %v345_v27 = vpop.f32.mrb[1].mxu0 }
 0x11a   : > { %v2226_v26 = vadd.f32 %v1697_v24, %v2220_v22  ;;  %v385_v28 = vpop.f32.mrb[1].mxu1  ;;  %v2229_v29 = vadd.f32 %v2220_v22, %v345_v27 }
 0x11b   : > { %v427_v31 = vsel %vm230_vm0, %v2223_v25, 0.0  ;;  %v473_v32 = vmul.f32 %v2223_v25, %v2223_v25  ;;  %v2238_v37 = vadd.f32 %v2220_v22, %v385_v28 }
 0x11c   : > { %v451_v30 = vsel %vm230_vm0, %v2226_v26, 0.0  ;;  %428 = vadd.xlane.f32.xlu0 %v427_v31  ;;  %v1688_v33 = vpop.f32.mrb[2].mxu0  ;;  %v424_v39 = vsel %vm230_vm0, %v2229_v29, 0.0  ;;  %v481_v40 = vmul.f32 %v2226_v26, %v2226_v26  ;;  %v472_v48 = vmul.f32 %v2229_v29, %v2229_v29 }
 0x11d   : > { %452 = vadd.xlane.f32.xlu1 %v451_v30  ;;  %v1700_v34 = vpop.f32.mrb[2].mxu1  ;;  %v355_v35 = vpop.f32.mrb[3].mxu0  ;;  %v491_v38 = vsel %vm230_vm0, %v473_v32, 0.0  ;;  %v2246_v43 = vadd.f32 %v1688_v33, %v2220_v22  ;;  %v448_v47 = vsel %vm230_vm0, %v2238_v37, 0.0  ;;  %v480_v56 = vmul.f32 %v2238_v37, %v2238_v37 }
 0x11e   : > { %v395_v36 = vpop.f32.mrb[3].mxu1  ;;  %v515_v46 = vsel %vm230_vm0, %v481_v40, 0.0  ;;  %v2254_v51 = vadd.f32 %v1700_v34, %v2220_v22  ;;  %v488_v55 = vsel %vm230_vm0, %v472_v48, 0.0  ;;  %v2264_v58 = vadd.f32 %v2220_v22, %v355_v35 }
 0x11f   : > { %v433_v52 = vsel %vm230_vm0, %v2246_v43, 0.0  ;;  %v2267_v59 = vadd.f32 %v2220_v22, %v395_v36  ;;  %v512_v60 = vsel %vm230_vm0, %v480_v56, 0.0  ;;  %v475_v63 = vmul.f32 %v2246_v43, %v2246_v43 }
 0x120   : > { %425 = vadd.xlane.f32.xlu0 %v424_v39  ;;  %v1691_v41 = vpop.f32.mrb[4].mxu0  ;;  %v457_v57 = vsel %vm230_vm0, %v2254_v51, 0.0  ;;  %v430_v61 = vsel %vm230_vm0, %v2264_v58, 0.0  ;;  %v474_v0 = vmul.f32 %v2264_v58, %v2264_v58  ;;  %v483_v3 = vmul.f32 %v2254_v51, %v2254_v51 }
 0x121   : > { %492 = vadd.xlane.f32.xlu1 %v491_v38  ;;  %v1703_v42 = vpop.f32.mrb[4].mxu1  ;;  %v365_v44 = vpop.f32.mrb[5].mxu0  ;;  %v454_v62 = vsel %vm230_vm0, %v2267_v59, 0.0  ;;  %v497_v1 = vsel %vm230_vm0, %v475_v63, 0.0  ;;  %v482_v4 = vmul.f32 %v2267_v59, %v2267_v59  ;;  %v2285_v5 = vadd.f32 %v1691_v41, %v2220_v22 }
 0x122   : > { %v405_v45 = vpop.f32.mrb[5].mxu1  ;;  %v494_v2 = vsel %vm230_vm0, %v474_v0, 0.0  ;;  %v2288_v6 = vadd.f32 %v2220_v22, %v365_v44  ;;  %v521_v7 = vsel %vm230_vm0, %v483_v3, 0.0  ;;  %v2293_v9 = vadd.f32 %v1703_v42, %v2220_v22 }
 0x123   : > { %v518_v8 = vsel %vm230_vm0, %v482_v4, 0.0  ;;  %v2296_v10 = vadd.f32 %v2220_v22, %v405_v45  ;;  %v439_v11 = vsel %vm230_vm0, %v2285_v5, 0.0  ;;  %v477_v15 = vmul.f32 %v2285_v5, %v2285_v5 }
 0x124   : > { %449 = vadd.xlane.f32.xlu0 %v448_v47  ;;  %v1694_v49 = vpop.f32.mrb[6].mxu0  ;;  %v436_v12 = vsel %vm230_vm0, %v2288_v6, 0.0  ;;  %v463_v13 = vsel %vm230_vm0, %v2293_v9, 0.0  ;;  %v476_v16 = vmul.f32 %v2288_v6, %v2288_v6  ;;  %v485_v19 = vmul.f32 %v2293_v9, %v2293_v9 }
 0x125   : > { %516 = vadd.xlane.f32.xlu1 %v515_v46  ;;  %v1706_v50 = vpop.f32.mrb[6].mxu1  ;;  %v375_v53 = vpop.f32.mrb[7].mxu0  ;;  %v460_v14 = vsel %vm230_vm0, %v2296_v10, 0.0  ;;  %v503_v17 = vsel %vm230_vm0, %v477_v15, 0.0  ;;  %v484_v20 = vmul.f32 %v2296_v10, %v2296_v10  ;;  %v2317_v21 = vadd.f32 %v1694_v49, %v2220_v22 }
 0x126   : > { %v415_v54 = vpop.f32.mrb[7].mxu1  ;;  %v500_v18 = vsel %vm230_vm0, %v476_v16, 0.0  ;;  %v2320_v23 = vadd.f32 %v2220_v22, %v375_v53  ;;  %v527_v24 = vsel %vm230_vm0, %v485_v19, 0.0  ;;  %v2325_v28 = vadd.f32 %v1706_v50, %v2220_v22 }
 0x127   : > { %v524_v27 = vsel %vm230_vm0, %v484_v20, 0.0  ;;  %v2328_v30 = vadd.f32 %v2220_v22, %v415_v54  ;;  %v445_v31 = vsel %vm230_vm0, %v2317_v21, 0.0  ;;  %v479_v35 = vmul.f32 %v2317_v21, %v2317_v21 }
 0x128   : > { %489 = vadd.xlane.f32.xlu0 %v488_v55  ;;  %v442_v32 = vsel %vm230_vm0, %v2320_v23, 0.0  ;;  %v469_v33 = vsel %vm230_vm0, %v2325_v28, 0.0  ;;  %v478_v22 = vmul.f32 %v2320_v23, %v2320_v23  ;;  %v487_v39 = vmul.f32 %v2325_v28, %v2325_v28 }
 0x129   : > { %434 = vadd.xlane.f32.xlu1 %v433_v52  ;;  %v466_v34 = vsel %vm230_vm0, %v2328_v30, 0.0  ;;  %v509_v36 = vsel %vm230_vm0, %v479_v35, 0.0  ;;  %v486_v40 = vmul.f32 %v2328_v30, %v2328_v30  ;;  %v2366_v35 = vld [vmem:[%s2984_s1 + $0x28] ss:$0 sm:$0xff] }
 0x12a   : > { %v506_v38 = vsel %vm230_vm0, %v478_v22, 0.0  ;;  %v533_v41 = vsel %vm230_vm0, %v487_v39, 0.0 }
 0x12b   : > { %v530_v42 = vsel %vm230_vm0, %v486_v40, 0.0 }
 0x12c   : > { %513 = vadd.xlane.f32.xlu0 %v512_v60 }
 0x12d   : > { %458 = vadd.xlane.f32.xlu1 %v457_v57 }
 0x130   : > { %455 = vadd.xlane.f32.xlu0 %v454_v62 }
 0x131   : > { %431 = vadd.xlane.f32.xlu1 %v430_v61 }
 0x134   : > { %495 = vadd.xlane.f32.xlu0 %v494_v2 }
 0x135   : > { %498 = vadd.xlane.f32.xlu1 %v497_v1 }
 0x138   : > { %519 = vadd.xlane.f32.xlu0 %v518_v8 }
 0x139   : > { %522 = vadd.xlane.f32.xlu1 %v521_v7 }
 0x13c   : > { %437 = vadd.xlane.f32.xlu0 %v436_v12 }
 0x13d   : > { %440 = vadd.xlane.f32.xlu1 %v439_v11 }
 0x140   : > { %461 = vadd.xlane.f32.xlu0 %v460_v14 }
 0x141   : > { %464 = vadd.xlane.f32.xlu1 %v463_v13 }
 0x144   : > { %501 = vadd.xlane.f32.xlu0 %v500_v18 }
 0x145   : > { %504 = vadd.xlane.f32.xlu1 %v503_v17 }
 0x148   : > { %525 = vadd.xlane.f32.xlu0 %v524_v27 }
 0x149   : > { %528 = vadd.xlane.f32.xlu1 %v527_v24 }
 0x14c   : > { %443 = vadd.xlane.f32.xlu0 %v442_v32 }
 0x14d   : > { %446 = vadd.xlane.f32.xlu1 %v445_v31 }
 0x150   : > { %467 = vadd.xlane.f32.xlu0 %v466_v34 }
 0x151   : > { %470 = vadd.xlane.f32.xlu1 %v469_v33 }
 0x154   : > { %507 = vadd.xlane.f32.xlu0 %v506_v38 }
 0x155   : > { %510 = vadd.xlane.f32.xlu1 %v509_v36 }
 0x158   : > { %531 = vadd.xlane.f32.xlu0 %v530_v42 }
 0x159   : > { %534 = vadd.xlane.f32.xlu1 %v533_v41 }
 0x1a9   : > { %v429_v45 = vpop.xlane.xlu0 %428 }
 0x1aa   : > { %v453_v44 = vpop.xlane.xlu1 %452  ;;  %v537_v46 = vmul.f32 0.03125, %v429_v45  ;;  %v2379_v45 = vld [vmem:[%s2984_s1 + $0x30] ss:$0 sm:$0xff] }
 0x1ab   : > { %v545_v49 = vmul.f32 0.03125, %v453_v44 }
 0x1ac   : > { %v569_v50 = vmul.f32 %v537_v46, %v537_v46  ;;  %v617_v32 = vsub.f32 %v2223_v25, %v537_v46 }
 0x1ad   : > { %v426_v48 = vpop.xlane.xlu0 %425  ;;  %v577_v57 = vmul.f32 %v545_v49, %v545_v49  ;;  %v625_v46 = vsub.f32 %v2226_v26, %v545_v49 }
 0x1ae   : > { %v493_v47 = vpop.xlane.xlu1 %492  ;;  %v2350_v54 = vmul.f32 0.03125, %v426_v48 }
 0x1af   : > { %v553_v52 = vmul.f32 0.03125, %v493_v47 }
 0x1b0   : > { %v568_v0 = vmul.f32 %v2350_v54, %v2350_v54  ;;  %v616_v49 = vsub.f32 %v2229_v29, %v2350_v54 }
 0x1b1   : > { %v585_v53 = vsub.f32 %v553_v52, %v569_v50  ;;  %v450_v56 = vpop.xlane.xlu0 %449 }
 0x1b2   : > { %v517_v55 = vpop.xlane.xlu1 %516  ;;  %v2354_v4 = vmul.f32 0.03125, %v450_v56 }
 0x1b3   : > { %v601_v60 = vmax.f32 %v585_v53, 0.0  ;;  %v561_v61 = vmul.f32 0.03125, %v517_v55 }
 0x1b4   : > { %v576_v14 = vmul.f32 %v2354_v4, %v2354_v4 }
 0x1b5   : > { %v633_v62 = vadd.f32 1e-05, %v601_v60  ;;  %v593_v63 = vsub.f32 %v561_v61, %v577_v57  ;;  %v490_v2 = vpop.xlane.xlu0 %489 }
 0x1b6   : > { %v435_v1 = vpop.xlane.xlu1 %434  ;;  %v552_v7 = vmul.f32 0.03125, %v490_v2 }
 0x1b7   : > { %1775 = vrsqrt.f32 %v633_v62  ;;  %v609_v3 = vmax.f32 %v593_v63, 0.0  ;;  %v2358_v19 = vmul.f32 0.03125, %v435_v1 }
 0x1b8   : > { %v584_v11 = vsub.f32 %v552_v7, %v568_v0 }
 0x1b9   : > { %v641_v8 = vadd.f32 1e-05, %v609_v3  ;;  %v514_v13 = vpop.xlane.xlu0 %513  ;;  %v571_v36 = vmul.f32 %v2358_v19, %v2358_v19 }
 0x1ba   : > { %v459_v12 = vpop.xlane.xlu1 %458  ;;  %v600_v15 = vmax.f32 %v584_v11, 0.0  ;;  %v560_v16 = vmul.f32 0.03125, %v514_v13 }
 0x1bb   : > { %1777 = vrsqrt.f32 %v641_v8  ;;  %v2370_v38 = vmul.f32 0.03125, %v459_v12 }
 0x1bc   : > { %v632_v17 = vadd.f32 1e-05, %v600_v15  ;;  %v592_v18 = vsub.f32 %v560_v16, %v576_v14 }
 0x1bd   : > { %v456_v24 = vpop.xlane.xlu0 %455  ;;  %v579_v55 = vmul.f32 %v2370_v38, %v2370_v38 }
 0x1be   : > { %v432_v20 = vpop.xlane.xlu1 %431  ;;  %1779 = vrsqrt.f32 %v632_v17  ;;  %v608_v27 = vmax.f32 %v592_v18, 0.0  ;;  %v2372_v39 = vmul.f32 0.03125, %v456_v24  ;;  %v624_v18 = vsub.f32 %v2238_v37, %v2354_v4  ;;  %v2403_v37 = vld [vmem:[%s2984_s1 + $0x38] ss:$0 sm:$0xff] }
 0x1bf   : > { %v2360_v31 = vmul.f32 0.03125, %v432_v20 }
 0x1c0   : > { %v640_v34 = vadd.f32 1e-05, %v608_v27  ;;  %v578_v56 = vmul.f32 %v2372_v39, %v2372_v39 }
 0x1c1   : > { %v1776_v33 = vpop.eup %1775  ;;  %v496_v41 = vpop.xlane.xlu0 %495  ;;  %v570_v25 = vmul.f32 %v2360_v31, %v2360_v31 }
 0x1c2   : > { %v665_v22 = vmul.f32 %v1776_v33, %v617_v32  ;;  %v499_v40 = vpop.xlane.xlu1 %498  ;;  %1781 = vrsqrt.f32 %v640_v34  ;;  %v554_v44 = vmul.f32 0.03125, %v496_v41 }
 0x1c3   : > { %v555_v42 = vmul.f32 0.03125, %v499_v40 }
 0x1c4   : > { %v685_v47 = vmul.f32 %v2366_v35, %v665_v22  ;;  %v586_v52 = vsub.f32 %v554_v44, %v570_v25 }
 0x1c5   : > { %v1778_v48 = vpop.eup %1777  ;;  %v587_v50 = vsub.f32 %v555_v42, %v571_v36  ;;  %v520_v60 = vpop.xlane.xlu0 %519 }
 0x1c6   : > { %v673_v53 = vmul.f32 %v1778_v48, %v625_v46  ;;  %v523_v57 = vpop.xlane.xlu1 %522  ;;  %v705_v61 = vadd.f32 %v2379_v45, %v685_v47  ;;  %v602_v63 = vmax.f32 %v586_v52, 0.0  ;;  %v562_v26 = vmul.f32 0.03125, %v520_v60 }
 0x1c7   : > { %v603_v62 = vmax.f32 %v587_v50, 0.0  ;;  %v563_v0 = vmul.f32 0.03125, %v523_v57  ;;  %v618_v57 = vsub.f32 %v2264_v58, %v2360_v31  ;;  %v627_v58 = vsub.f32 %v2254_v51, %v2370_v38 }
 0x1c8   : > { %1783 = vtanh.f32 %v705_v61  ;;  %v693_v1 = vmul.f32 %v2366_v35, %v673_v53  ;;  %v1780_v2 = vpop.eup %1779  ;;  %v634_v7 = vadd.f32 1e-05, %v602_v63  ;;  %v594_v11 = vsub.f32 %v562_v26, %v578_v56 }
 0x1c9   : > { %v635_v3 = vadd.f32 1e-05, %v603_v62  ;;  %v595_v8 = vsub.f32 %v563_v0, %v579_v55  ;;  %v664_v12 = vmul.f32 %v1780_v2, %v616_v49  ;;  %v438_v14 = vpop.xlane.xlu0 %437  ;;  %v619_v53 = vsub.f32 %v2246_v43, %v2358_v19 }
 0x1ca   : > { %v441_v13 = vpop.xlane.xlu1 %440  ;;  %v713_v15 = vadd.f32 %v2379_v45, %v693_v1  ;;  %v610_v17 = vmax.f32 %v594_v11, 0.0  ;;  %v2397_v22 = vmul.f32 0.03125, %v438_v14 }
 0x1cb   : > { %1785 = vrsqrt.f32 %v635_v3  ;;  %v611_v16 = vmax.f32 %v595_v8, 0.0  ;;  %v684_v29 = vmul.f32 %v2366_v35, %v664_v12  ;;  %v2395_v32 = vmul.f32 0.03125, %v441_v13 }
 0x1cc   : > { %1787 = vrsqrt.f32 %v634_v7  ;;  %v1782_v54 = vpop.eup %1781  ;;  %v642_v24 = vadd.f32 1e-05, %v610_v17  ;;  %v572_v47 = vmul.f32 %v2397_v22, %v2397_v22 }
 0x1cd   : > { %v643_v20 = vadd.f32 1e-05, %v611_v16  ;;  %v672_v27 = vmul.f32 %v1782_v54, %v624_v18  ;;  %v462_v34 = vpop.xlane.xlu0 %461  ;;  %1789 = vtanh.f32 %v713_v15  ;;  %v704_v36 = vadd.f32 %v2379_v45, %v684_v29 }
 0x1ce   : > { %v465_v33 = vpop.xlane.xlu1 %464  ;;  %v573_v41 = vmul.f32 %v2395_v32, %v2395_v32  ;;  %v2416_v55 = vmul.f32 0.03125, %v462_v34  ;;  %v626_v18 = vsub.f32 %v2267_v59, %v2372_v39 }
 0x1cf   : > { %1791 = vrsqrt.f32 %v643_v20  ;;  %v692_v4 = vmul.f32 %v2366_v35, %v672_v27  ;;  %v2408_v25 = vmul.f32 0.03125, %v465_v33 }
 0x1d0   : > { %1793 = vrsqrt.f32 %v642_v24  ;;  %v580_v31 = vmul.f32 %v2416_v55, %v2416_v55 }
 0x1d1   : > { %v502_v44 = vpop.xlane.xlu0 %501  ;;  %1795 = vtanh.f32 %v704_v36  ;;  %v712_v46 = vadd.f32 %v2379_v45, %v692_v4  ;;  %v581_v26 = vmul.f32 %v2408_v25, %v2408_v25 }
 0x1d2   : > { %v1784_v40 = vpop.eup %1783  ;;  %v505_v42 = vpop.xlane.xlu1 %504  ;;  %v556_v50 = vmul.f32 0.03125, %v502_v44 }
 0x1d3   : > { %v557_v48 = vmul.f32 0.03125, %v505_v42  ;;  %v741_v52 = vmul.f32 %v1784_v40, %v2403_v37  ;;  %1797 = vtanh.f32 %v712_v46 }
 0x1d4   : > { %v588_v61 = vsub.f32 %v556_v50, %v572_v47 }
 0x1d5   : > { %v1786_v56 = vpop.eup %1785  ;;  %v589_v60 = vsub.f32 %v557_v48, %v573_v41  ;;  %v759_v62 = vsel %vm230_vm0, %v741_v52, 0.0  ;;  %v526_v1 = vpop.xlane.xlu0 %525 }
 0x1d6   : > { %v1788_v63 = vpop.eup %1787  ;;  %v667_v0 = vmul.f32 %v1786_v56, %v619_v53  ;;  %760 = vadd.xlane.f32.xlu1 %v759_v62  ;;  %v529_v49 = vpop.xlane.xlu1 %528  ;;  %v604_v2 = vmax.f32 %v588_v61, 0.0  ;;  %v564_v8 = vmul.f32 0.03125, %v526_v1 }
 0x1d7   : > { %v666_v43 = vmul.f32 %v1788_v63, %v618_v57  ;;  %v605_v19 = vmax.f32 %v589_v60, 0.0  ;;  %v565_v3 = vmul.f32 0.03125, %v529_v49  ;;  %v1790_v7 = vpop.eup %1789 }
 0x1d8   : > { %v687_v11 = vmul.f32 %v2366_v35, %v667_v0  ;;  %v636_v14 = vadd.f32 1e-05, %v604_v2  ;;  %v749_v16 = vmul.f32 %v1790_v7, %v2403_v37  ;;  %v596_v29 = vsub.f32 %v564_v8, %v580_v31 }
 0x1d9   : > { %v1792_v12 = vpop.eup %1791  ;;  %v637_v13 = vadd.f32 1e-05, %v605_v19  ;;  %v597_v15 = vsub.f32 %v565_v3, %v581_v26  ;;  %v444_v20 = vpop.xlane.xlu0 %443  ;;  %v686_v38 = vmul.f32 %v2366_v35, %v666_v43  ;;  %v621_v19 = vsub.f32 %v2285_v5, %v2395_v32 }
 0x1da   : > { %v1794_v17 = vpop.eup %1793  ;;  %v447_v54 = vpop.xlane.xlu1 %446  ;;  %v707_v51 = vadd.f32 %v2379_v45, %v687_v11  ;;  %v783_v27 = vsel %vm230_vm0, %v749_v16, 0.0  ;;  %v675_v34 = vmul.f32 %v1792_v12, %v627_v58  ;;  %v612_v4 = vmax.f32 %v596_v29, 0.0 }
 0x1db   : > { %1799 = vrsqrt.f32 %v637_v13  ;;  %v613_v24 = vmax.f32 %v597_v15, 0.0  ;;  %v1796_v33 = vpop.eup %1795  ;;  %v674_v36 = vmul.f32 %v1794_v17, %v626_v18  ;;  %784 = vadd.xlane.f32.xlu1 %v783_v27  ;;  %v706_v39 = vadd.f32 %v2379_v45, %v686_v38 }
 0x1dc   : > { %1801 = vrsqrt.f32 %v636_v14  ;;  %v740_v59 = vmul.f32 %v1796_v33, %v2403_v37  ;;  %v644_v42 = vadd.f32 1e-05, %v612_v4  ;;  %v2436_v44 = vmul.f32 0.03125, %v447_v54 }
 0x1dd   : > { %v645_v40 = vadd.f32 1e-05, %v613_v24  ;;  %1803 = vtanh.f32 %v707_v51  ;;  %v1798_v41 = vpop.eup %1797  ;;  %v468_v47 = vpop.xlane.xlu0 %467  ;;  %v2438_v48 = vmul.f32 0.03125, %v444_v20  ;;  %v695_v53 = vmul.f32 %v2366_v35, %v675_v34 }
 0x1de   : > { %v471_v46 = vpop.xlane.xlu1 %470  ;;  %v756_v50 = vsel %vm230_vm0, %v740_v59, 0.0  ;;  %v748_v52 = vmul.f32 %v1798_v41, %v2403_v37  ;;  %v694_v56 = vmul.f32 %v2366_v35, %v674_v36  ;;  %v575_v57 = vmul.f32 %v2436_v44, %v2436_v44 }
 0x1df   : > { %1805 = vrsqrt.f32 %v645_v40  ;;  %757 = vadd.xlane.f32.xlu0 %v756_v50  ;;  %v2446_v60 = vmul.f32 0.03125, %v471_v46  ;;  %v715_v0 = vadd.f32 %v2379_v45, %v695_v53  ;;  %v574_v26 = vmul.f32 %v2438_v48, %v2438_v48 }
 0x1e0   : > { %1807 = vrsqrt.f32 %v644_v42  ;;  %v780_v62 = vsel %vm230_vm0, %v748_v52, 0.0  ;;  %v714_v43 = vadd.f32 %v2379_v45, %v694_v56  ;;  %v2455_v2 = vmul.f32 0.03125, %v468_v47 }
 0x1e1   : > { %1809 = vtanh.f32 %v706_v39  ;;  %v508_v63 = vpop.xlane.xlu0 %507  ;;  %v620_v7 = vsub.f32 %v2288_v6, %v2397_v22  ;;  %v629_v11 = vsub.f32 %v2293_v9, %v2408_v25  ;;  %v628_v12 = vsub.f32 %v2296_v10, %v2416_v55 }
 0x1e2   : > { %v511_v61 = vpop.xlane.xlu1 %510  ;;  %v558_v1 = vmul.f32 0.03125, %v508_v63  ;;  %1811 = vtanh.f32 %v715_v0  ;;  %v583_v5 = vmul.f32 %v2446_v60, %v2446_v60  ;;  %v582_v18 = vmul.f32 %v2455_v2, %v2455_v2 }
 0x1e3   : > { %v559_v49 = vmul.f32 0.03125, %v511_v61  ;;  %781 = vadd.xlane.f32.xlu0 %v780_v62  ;;  %1813 = vtanh.f32 %v714_v43  ;;  %v622_v43 = vsub.f32 %v2320_v23, %v2438_v48 }
 0x1e4   : > { %v590_v31 = vsub.f32 %v558_v1, %v574_v26 }
 0x1e5   : > { %v1800_v3 = vpop.eup %1799  ;;  %v591_v58 = vsub.f32 %v559_v49, %v575_v57  ;;  %v532_v14 = vpop.xlane.xlu0 %531  ;;  %v623_v49 = vsub.f32 %v2317_v21, %v2436_v44  ;;  %v630_v21 = vsub.f32 %v2328_v30, %v2455_v2 }
 0x1e6   : > { %v1802_v8 = vpop.eup %1801  ;;  %v669_v13 = vmul.f32 %v1800_v3, %v621_v19  ;;  %v535_v32 = vpop.xlane.xlu1 %534  ;;  %v606_v6 = vmax.f32 %v590_v31, 0.0  ;;  %v566_v29 = vmul.f32 0.03125, %v532_v14 }
 0x1e7   : > { %v1804_v15 = vpop.eup %1803  ;;  %v668_v16 = vmul.f32 %v1802_v8, %v620_v7  ;;  %v607_v17 = vmax.f32 %v591_v58, 0.0  ;;  %v567_v22 = vmul.f32 0.03125, %v535_v32  ;;  %v631_v8 = vsub.f32 %v2325_v28, %v2446_v60 }
 0x1e8   : > { %v743_v9 = vmul.f32 %v1804_v15, %v2403_v37  ;;  %v689_v25 = vmul.f32 %v2366_v35, %v669_v13  ;;  %v638_v54 = vadd.f32 1e-05, %v606_v6  ;;  %v598_v27 = vsub.f32 %v566_v29, %v582_v18 }
 0x1e9   : > { %v1806_v10 = vpop.eup %1805  ;;  %v639_v55 = vadd.f32 1e-05, %v607_v17  ;;  %v599_v20 = vsub.f32 %v567_v22, %v583_v5  ;;  %v688_v51 = vmul.f32 %v2366_v35, %v668_v16 }
 0x1ea   : > { %v1808_v38 = vpop.eup %1807  ;;  %v677_v24 = vmul.f32 %v1806_v10, %v629_v11  ;;  %v765_v33 = vsel %vm230_vm0, %v743_v9, 0.0  ;;  %v709_v34 = vadd.f32 %v2379_v45, %v689_v25  ;;  %v614_v39 = vmax.f32 %v598_v27, 0.0 }
 0x1eb   : > { %v1810_v36 = vpop.eup %1809  ;;  %v676_v4 = vmul.f32 %v1808_v38, %v628_v12  ;;  %1815 = vrsqrt.f32 %v639_v55  ;;  %v615_v40 = vmax.f32 %v599_v20, 0.0  ;;  %766 = vadd.xlane.f32.xlu1 %v765_v33  ;;  %v708_v59 = vadd.f32 %v2379_v45, %v688_v51 }
 0x1ec   : > { %1817 = vrsqrt.f32 %v638_v54  ;;  %v742_v41 = vmul.f32 %v1810_v36, %v2403_v37  ;;  %v697_v42 = vmul.f32 %v2366_v35, %v677_v24  ;;  %v1812_v50 = vpop.eup %1811  ;;  %v646_v52 = vadd.f32 1e-05, %v614_v39 }
 0x1ed   : > { %v647_v46 = vadd.f32 1e-05, %v615_v40  ;;  %1819 = vtanh.f32 %v709_v34  ;;  %v696_v47 = vmul.f32 %v2366_v35, %v676_v4  ;;  %v1814_v57 = vpop.eup %1813  ;;  %v751_v61 = vmul.f32 %v1812_v50, %v2403_v37 }
 0x1ee   : > { %v762_v53 = vsel %vm230_vm0, %v742_v41, 0.0  ;;  %1821 = vtanh.f32 %v708_v59  ;;  %v717_v56 = vadd.f32 %v2379_v45, %v697_v42  ;;  %v750_v63 = vmul.f32 %v1814_v57, %v2403_v37 }
 0x1ef   : > { %1823 = vrsqrt.f32 %v647_v46  ;;  %763 = vadd.xlane.f32.xlu0 %v762_v53  ;;  %v716_v62 = vadd.f32 %v2379_v45, %v696_v47  ;;  %v789_v0 = vsel %vm230_vm0, %v751_v61, 0.0  ;;  %v820_v42 = vlaneseq }
 0x1f0   : > { %1825 = vrsqrt.f32 %v646_v52  ;;  %790 = vadd.xlane.f32.xlu1 %v789_v0  ;;  %v786_v26 = vsel %vm230_vm0, %v750_v63, 0.0 }
 0x1f1   : > { %1827 = vtanh.f32 %v717_v56  ;;  %v2531_v50 = vshrl.u32 %v820_v42, 7 }
 0x1f2   : > { %1829 = vtanh.f32 %v716_v62 }
 0x1f3   : > { %787 = vadd.xlane.f32.xlu0 %v786_v26 }
 0x1f5   : > { %v1816_v1 = vpop.eup %1815 }
 0x1f6   : > { %v1818_v19 = vpop.eup %1817  ;;  %v671_v3 = vmul.f32 %v1816_v1, %v623_v49 }
 0x1f7   : > { %v1820_v7 = vpop.eup %1819  ;;  %v670_v58 = vmul.f32 %v1818_v19, %v622_v43 }
 0x1f8   : > { %v1822_v31 = vpop.eup %1821  ;;  %v745_v11 = vmul.f32 %v1820_v7, %v2403_v37  ;;  %v691_v12 = vmul.f32 %v2366_v35, %v671_v3 }
 0x1f9   : > { %v1824_v13 = vpop.eup %1823  ;;  %v744_v44 = vmul.f32 %v1822_v31, %v2403_v37  ;;  %v690_v23 = vmul.f32 %v2366_v35, %v670_v58 }
 0x1fa   : > { %v1826_v48 = vpop.eup %1825  ;;  %v679_v5 = vmul.f32 %v1824_v13, %v631_v8  ;;  %v771_v32 = vsel %vm230_vm0, %v745_v11, 0.0  ;;  %v711_v14 = vadd.f32 %v2379_v45, %v691_v12 }
 0x1fb   : > { %v1828_v15 = vpop.eup %1827  ;;  %v678_v28 = vmul.f32 %v1826_v48, %v630_v21  ;;  %772 = vadd.xlane.f32.xlu1 %v771_v32  ;;  %v768_v60 = vsel %vm230_vm0, %v744_v44, 0.0  ;;  %v710_v16 = vadd.f32 %v2379_v45, %v690_v23 }
 0x1fc   : > { %v1830_v17 = vpop.eup %1829  ;;  %769 = vadd.xlane.f32.xlu0 %v768_v60  ;;  %v753_v30 = vmul.f32 %v1828_v15, %v2403_v37  ;;  %1831 = vtanh.f32 %v711_v14  ;;  %v699_v2 = vmul.f32 %v2366_v35, %v679_v5 }
 0x1fd   : > { %v752_v6 = vmul.f32 %v1830_v17, %v2403_v37  ;;  %1833 = vtanh.f32 %v710_v16  ;;  %v698_v22 = vmul.f32 %v2366_v35, %v678_v28 }
 0x1fe   : > { %v795_v18 = vsel %vm230_vm0, %v753_v30, 0.0  ;;  %v719_v29 = vadd.f32 %v2379_v45, %v699_v2 }
 0x1ff   : > { %796 = vadd.xlane.f32.xlu1 %v795_v18  ;;  %v792_v9 = vsel %vm230_vm0, %v752_v6, 0.0  ;;  %v718_v25 = vadd.f32 %v2379_v45, %v698_v22 }
 0x200   : > { %793 = vadd.xlane.f32.xlu0 %v792_v9  ;;  %1835 = vtanh.f32 %v719_v29 }
 0x201   : > { %1837 = vtanh.f32 %v718_v25 }
 0x206   : > { %v1832_v10 = vpop.eup %1831 }
 0x207   : > { %v1834_v55 = vpop.eup %1833  ;;  %v747_v54 = vmul.f32 %v1832_v10, %v2403_v37 }
 0x208   : > { %v746_v20 = vmul.f32 %v1834_v55, %v2403_v37 }
 0x209   : > { %v777_v35 = vsel %vm230_vm0, %v747_v54, 0.0  ;;  %v2036_v54 = vmov 0  }
 0x20a   : > { %v1836_v51 = vpop.eup %1835  ;;  %778 = vadd.xlane.f32.xlu1 %v777_v35  ;;  %v774_v38 = vsel %vm230_vm0, %v746_v20, 0.0  ;;  %1774 = vset.pattern.permute.xlu0 %v2036_v54  ;;  %v918_v20 = vsub.s32 0, %v2531_v50  ;;  %v922_v35 = vsub.s32 1, %v2531_v50 }
 0x20b   : > { %v1838_v24 = vpop.eup %1837  ;;  %775 = vadd.xlane.f32.xlu0 %v774_v38  ;;  %v755_v27 = vmul.f32 %v1836_v51, %v2403_v37  ;;  %1773 = vset.pattern.permute.xlu1 %v2036_v54 }
 0x20c   : > { %v754_v45 = vmul.f32 %v1838_v24, %v2403_v37  ;;  %v821_v37 = vand.u32 127, %v820_v42 }
 0x20d   : > { %v801_v33 = vsel %vm230_vm0, %v755_v27, 0.0  ;;  %v938_v27 = vsub.s32 5, %v2531_v50 }
 0x20e   : > { %802 = vadd.xlane.f32.xlu1 %v801_v33  ;;  %v798_v34 = vsel %vm230_vm0, %v754_v45, 0.0  ;;  %v826_v52 = vadd.s32 4294967288, %v821_v37  ;;  %v2541_v61 = vsub.s32 %v821_v37, %v2531_v50  ;;  %v942_v37 = vsub.s32 6, %v2531_v50 }
 0x20f   : > { %799 = vadd.xlane.f32.xlu0 %v798_v34  ;;  %v926_v34 = vsub.s32 2, %v2531_v50 }
 0x210   : > { %v2538_v57 = vsub.s32 %v826_v52, %v2531_v50 }
 0x263   : > { %v2515_v36 = vpop.xlane.xlu1 %760 }
 0x264   : > { %v830_v19 = vrot.slane %v2515_v36, %v2538_v57 }
 0x268   : > { %v2519_v40 = vpop.xlane.xlu1 %784 }
 0x269   : > { %v867_v23 = vrot.slane %v2519_v40, %v2538_v57 }
 0x26c   : > { %v2517_v4 = vpop.xlane.xlu0 %757 }
 0x26d   : > { %v825_v43 = vrot.slane %v2517_v4, %v2541_v61 }
 0x26f   : > { %v832_v12 = vsel %vm831_vm1, %v830_v19, %v825_v43  ;;  %v930_v19 = vsub.s32 3, %v2531_v50 }
 0x270   : > { %v2521_v59 = vpop.xlane.xlu0 %781 }
 0x271   : > { %v863_v58 = vrot.slane %v2521_v59, %v2541_v61 }
 0x273   : > { %v868_v60 = vsel %vm831_vm1, %v867_v23, %v863_v58 }
 0x278   : > { %v2523_v39 = vpop.xlane.xlu1 %766 }
 0x279   : > { %v840_v62 = vrot.slane %v2523_v39, %v2538_v57 }
 0x27c   : > { %v2525_v41 = vpop.xlane.xlu0 %763 }
 0x27d   : > { %v2527_v46 = vpop.xlane.xlu1 %790  ;;  %v836_v63 = vrot.slane %v2525_v41, %v2541_v61 }
 0x27e   : > { %v876_v13 = vrot.slane %v2527_v46, %v2538_v57 }
 0x27f   : > { %v841_v3 = vsel %vm831_vm1, %v840_v62, %v836_v63 }
 0x280   : > { %v2529_v47 = vpop.xlane.xlu0 %787  ;;  %v897_v48 = vsel %vm896_vm2, %v841_v3, %v832_v12 }
 0x281   : > { %v872_v21 = vrot.slane %v2529_v47, %v2541_v61 }
 0x283   : > { %v877_v2 = vsel %vm831_vm1, %v876_v13, %v872_v21 }
 0x288   : > { %v2533_v53 = vpop.xlane.xlu1 %772 }
 0x289   : > { %v2535_v56 = vpop.xlane.xlu0 %769  ;;  %v849_v26 = vrot.slane %v2533_v53, %v2538_v57 }
 0x28a   : > { %v845_v49 = vrot.slane %v2535_v56, %v2541_v61 }
 0x28c   : > { %v2547_v0 = vpop.xlane.xlu1 %796  ;;  %v850_v31 = vsel %vm831_vm1, %v849_v26, %v845_v49 }
 0x28d   : > { %v2553_v1 = vpop.xlane.xlu0 %793  ;;  %v885_v5 = vrot.slane %v2547_v0, %v2538_v57  ;;  %v899_v14 = vsel %vm898_vm3, %v850_v31, %v897_v48 }
 0x28e   : > { %v881_v32 = vrot.slane %v2553_v1, %v2541_v61 }
 0x290   : > { %v886_v18 = vsel %vm831_vm1, %v885_v5, %v881_v32 }
 0x297   : > { %v2560_v7 = vpop.xlane.xlu1 %778 }
 0x298   : > { %v858_v8 = vrot.slane %v2560_v7, %v2538_v57  ;;  %v2567_v11 = vpop.xlane.xlu0 %775 }
 0x299   : > { %v854_v44 = vrot.slane %v2567_v11, %v2541_v61 }
 0x29b   : > { %v859_v15 = vsel %vm831_vm1, %v858_v8, %v854_v44  ;;  %v2585_v28 = vpop.xlane.xlu1 %802 }
 0x29c   : > { %v901_v16 = vsel %vm900_vm4, %v859_v15, %v899_v14  ;;  %v894_v17 = vrot.slane %v2585_v28, %v2538_v57  ;;  %v2591_v30 = vpop.xlane.xlu0 %799 }
 0x29d   : > { %v890_v6 = vrot.slane %v2591_v30, %v2541_v61  ;;  %v903_v22 = vsel %vm902_vm5, %v868_v60, %v901_v16 }
 0x29e   : > { %v905_v29 = vsel %vm904_vm6, %v877_v2, %v903_v22 }
 0x29f   : > { %v895_v9 = vsel %vm831_vm1, %v894_v17, %v890_v6  ;;  %v907_v25 = vsel %vm906_vm7, %v886_v18, %v905_v29 }
 0x2a0   : > { %v909_v10 = vsel %vm908_vm8, %v895_v9, %v907_v25 }
 0x2a1   : > { %v912_v55 = vsel %vm911_vm9, %v909_v10, -inf }
 0x2a2   : > { %913 = vmax.xlane.f32.xlu0 %v912_v55 }
 0x32f   : > { %v914_v51 = vpop.xlane.xlu0 %913 }
 0x330   : > { %v919_v38 = vrot.slane %v914_v51, %v918_v20  ;;  %v923_v24 = vrot.slane %v914_v51, %v922_v35  ;;  %v2617_v52 = vrot.slane %v914_v51, %v938_v27  ;;  %v927_v26 = vrot.slane %v914_v51, %v926_v34 }
 0x331   : > { %v931_v12 = vrot.slane %v914_v51, %v930_v19 }
 0x332   : > { %v956_v45 = vsub.f32 %v2517_v4, %v919_v38  ;;  %v957_v33 = vsub.f32 %v2515_v36, %v919_v38  ;;  %v958_v42 = vsub.f32 %v2525_v41, %v923_v24  ;;  %v959_v49 = vsub.f32 %v2523_v39, %v923_v24 }
 0x333   : > { %v946_v36 = vsub.s32 7, %v2531_v50  ;;  %v2625_v41 = vrot.slane %v914_v51, %v942_v37  ;;  %v966_v43 = vsub.f32 %v2529_v47, %v2617_v52  ;;  %v960_v3 = vsub.f32 %v2535_v56, %v927_v26 }
 0x334   : > { %v972_v62 = vmul.f32 1.442695, %v956_v45  ;;  %v974_v63 = vmul.f32 1.442695, %v957_v33  ;;  %v976_v4 = vmul.f32 1.442695, %v958_v42  ;;  %v961_v13 = vsub.f32 %v2533_v53, %v927_v26 }
 0x335   : > { %v978_v58 = vmul.f32 1.442695, %v959_v49  ;;  %v947_v39 = vrot.slane %v914_v51, %v946_v36  ;;  %v968_v31 = vsub.f32 %v2553_v1, %v2625_v41  ;;  %v992_v8 = vmul.f32 1.442695, %v966_v43 }
 0x336   : > { %1839 = vpow2.f32 %v972_v62  ;;  %v980_v47 = vmul.f32 1.442695, %v960_v3  ;;  %v934_v1 = vsub.s32 4, %v2531_v50  ;;  %v962_v48 = vsub.f32 %v2567_v11, %v931_v12 }
 0x337   : > { %1841 = vpow2.f32 %v974_v63  ;;  %v970_v56 = vsub.f32 %v2591_v30, %v947_v39  ;;  %v996_v44 = vmul.f32 1.442695, %v968_v31  ;;  %v982_v5 = vmul.f32 1.442695, %v961_v13 }
 0x338   : > { %1843 = vpow2.f32 %v976_v4  ;;  %v935_v14 = vrot.slane %v914_v51, %v934_v1  ;;  %v963_v15 = vsub.f32 %v2560_v7, %v931_v12  ;;  %v984_v60 = vmul.f32 1.442695, %v962_v48 }
 0x339   : > { %1845 = vpow2.f32 %v978_v58  ;;  %v1000_v32 = vmul.f32 1.442695, %v970_v56  ;;  %v967_v29 = vsub.f32 %v2527_v46, %v2617_v52  ;;  %v971_v54 = vsub.f32 %v2585_v28, %v947_v39 }
 0x33a   : > { %1847 = vpow2.f32 %v992_v8  ;;  %v964_v17 = vsub.f32 %v2521_v59, %v935_v14  ;;  %v986_v30 = vmul.f32 1.442695, %v963_v15  ;;  %v965_v6 = vsub.f32 %v2519_v40, %v935_v14 }
 0x33b   : > { %1849 = vpow2.f32 %v980_v47  ;;  %v969_v40 = vsub.f32 %v2547_v0, %v2625_v41  ;;  %v994_v10 = vmul.f32 1.442695, %v967_v29  ;;  %v1002_v38 = vmul.f32 1.442695, %v971_v54 }
 0x33c   : > { %1851 = vpow2.f32 %v996_v44  ;;  %v988_v22 = vmul.f32 1.442695, %v964_v17  ;;  %v990_v9 = vmul.f32 1.442695, %v965_v6 }
 0x33d   : > { %1853 = vpow2.f32 %v982_v5  ;;  %v998_v46 = vmul.f32 1.442695, %v969_v40 }
 0x33e   : > { %1855 = vpow2.f32 %v1000_v32 }
 0x33f   : > { %1857 = vpow2.f32 %v984_v60 }
 0x340   : > { %v2638_v21 = vpop.eup %1839  ;;  %1859 = vpow2.f32 %v986_v30 }
 0x341   : > { %v2641_v23 = vpop.eup %1841  ;;  %1021 = vperm.xlu1 %1773, %v2638_v21   ;;  %1861 = vpow2.f32 %v988_v22 }
 0x342   : > { %1024 = vperm.xlu0 %1774, %v2641_v23   ;;  %v2647_v53 = vpop.eup %1843  ;;  %1863 = vpow2.f32 %v990_v9 }
 0x343   : > { %v2653_v16 = vpop.eup %1845  ;;  %1865 = vpow2.f32 %v994_v10 }
 0x344   : > { %v2656_v11 = vpop.eup %1847  ;;  %1867 = vpow2.f32 %v998_v46 }
 0x345   : > { %1027 = vperm.xlu1 %1773, %v2647_v53   ;;  %v2660_v2 = vpop.eup %1849  ;;  %1869 = vpow2.f32 %v1002_v38 }
 0x346   : > { %1051 = vperm.xlu0 %1774, %v2656_v11   ;;  %v2663_v7 = vpop.eup %1851 }
 0x347   : > { %v2667_v18 = vpop.eup %1853 }
 0x348   : > { %v2670_v59 = vpop.eup %1855 }
 0x349   : > { %1030 = vperm.xlu1 %1773, %v2653_v16   ;;  %v2675_v25 = vpop.eup %1857 }
 0x34a   : > { %1057 = vperm.xlu0 %1774, %v2663_v7   ;;  %v2680_v55 = vpop.eup %1859 }
 0x34b   : > { %v2684_v51 = vpop.eup %1861 }
 0x34c   : > { %v2687_v24 = vpop.eup %1863 }
 0x34d   : > { %1033 = vperm.xlu1 %1773, %v2660_v2   ;;  %v2690_v0 = vpop.eup %1865 }
 0x34e   : > { %1063 = vperm.xlu0 %1774, %v2670_v59   ;;  %v2693_v45 = vpop.eup %1867 }
 0x34f   : > { %v2696_v28 = vpop.eup %1869 }
 0x351   : > { %1036 = vperm.xlu1 %1773, %v2667_v18  }
 0x355   : > { %1039 = vperm.xlu1 %1773, %v2675_v25  }
 0x359   : > { %1042 = vperm.xlu1 %1773, %v2680_v55  }
 0x35d   : > { %1045 = vperm.xlu1 %1773, %v2684_v51  }
 0x361   : > { %1048 = vperm.xlu1 %1773, %v2687_v24  }
 0x365   : > { %1054 = vperm.xlu1 %1773, %v2690_v0  }
 0x369   : > { %1060 = vperm.xlu1 %1773, %v2693_v45  }
 0x36d   : > { %1066 = vperm.xlu1 %1773, %v2696_v28  }
 0x3c0   : > { %v1022_v33 = vpop.permute.xlu1 %1021 }
 0x3c1   : > { %v1025_v49 = vpop.permute.xlu0 %1024  ;;  %v1071_v13 = vrot.slane %v1022_v33, %v2541_v61 }
 0x3c2   : > { %v1075_v12 = vrot.slane %v1025_v49, %v2538_v57 }
 0x3c4   : > { %v1028_v42 = vpop.permute.xlu1 %1027  ;;  %v1076_v30 = vsel %vm831_vm1, %v1075_v12, %v1071_v13 }
 0x3c5   : > { %v1052_v43 = vpop.permute.xlu0 %1051  ;;  %v1080_v47 = vrot.slane %v1028_v42, %v2541_v61 }
 0x3c6   : > { %v1116_v6 = vrot.slane %v1052_v43, %v2541_v61 }
 0x3c8   : > { %v1031_v52 = vpop.permute.xlu1 %1030 }
 0x3c9   : > { %v1084_v58 = vrot.slane %v1031_v52, %v2538_v57  ;;  %v1058_v39 = vpop.permute.xlu0 %1057 }
 0x3ca   : > { %v1125_v9 = vrot.slane %v1058_v39, %v2541_v61 }
 0x3cb   : > { %v1085_v5 = vsel %vm831_vm1, %v1084_v58, %v1080_v47 }
 0x3cc   : > { %v1034_v62 = vpop.permute.xlu1 %1033  ;;  %v1140_v40 = vsel %vm896_vm2, %v1085_v5, %v1076_v30  ;;  %v1887_v30 = vld [vmem:[%s2167_s11 + $0x8] sm:$0xff] }
 0x3cd   : > { %v1089_v44 = vrot.slane %v1034_v62, %v2541_v61  ;;  %v1064_v10 = vpop.permute.xlu0 %1063 }
 0x3ce   : > { %v1134_v62 = vrot.slane %v1064_v10, %v2541_v61  ;;  %v1890_v10 = vld [vmem:[%s2167_s11 + $0x10] sm:$0xff] }
 0x3d0   : > { %v1037_v63 = vpop.permute.xlu1 %1036 }
 0x3d1   : > { %v1093_v31 = vrot.slane %v1037_v63, %v2538_v57 }
 0x3d3   : > { %v1094_v15 = vsel %vm831_vm1, %v1093_v31, %v1089_v44 }
 0x3d4   : > { %v1040_v26 = vpop.permute.xlu1 %1039  ;;  %v1141_v46 = vsel %vm898_vm3, %v1094_v15, %v1140_v40 }
 0x3d5   : > { %v1098_v32 = vrot.slane %v1040_v26, %v2541_v61 }
 0x3d8   : > { %v1043_v4 = vpop.permute.xlu1 %1042 }
 0x3d9   : > { %v1102_v56 = vrot.slane %v1043_v4, %v2538_v57 }
 0x3db   : > { %v1103_v22 = vsel %vm831_vm1, %v1102_v56, %v1098_v32 }
 0x3dc   : > { %v1046_v41 = vpop.permute.xlu1 %1045  ;;  %v1142_v33 = vsel %vm900_vm4, %v1103_v22, %v1141_v46 }
 0x3dd   : > { %v1107_v60 = vrot.slane %v1046_v41, %v2541_v61 }
 0x3e0   : > { %v1049_v3 = vpop.permute.xlu1 %1048 }
 0x3e1   : > { %v1111_v48 = vrot.slane %v1049_v3, %v2538_v57 }
 0x3e3   : > { %v1112_v54 = vsel %vm831_vm1, %v1111_v48, %v1107_v60 }
 0x3e4   : > { %v1055_v8 = vpop.permute.xlu1 %1054  ;;  %v1143_v63 = vsel %vm902_vm5, %v1112_v54, %v1142_v33 }
 0x3e5   : > { %v1120_v14 = vrot.slane %v1055_v8, %v2538_v57 }
 0x3e7   : > { %v1121_v38 = vsel %vm831_vm1, %v1120_v14, %v1116_v6  ;;  %v1888_v6 = vld [vmem:[%s2167_s11] sm:$0xff] }
 0x3e8   : > { %v1061_v17 = vpop.permute.xlu1 %1060  ;;  %v1144_v49 = vsel %vm904_vm6, %v1121_v38, %v1143_v63 }
 0x3e9   : > { %v1129_v29 = vrot.slane %v1061_v17, %v2538_v57 }
 0x3eb   : > { %v1130_v42 = vsel %vm831_vm1, %v1129_v29, %v1125_v9  ;;  %v1889_v29 = vld [vmem:[%s2167_s11 + $0x18] sm:$0xff] }
 0x3ec   : > { %v1067_v52 = vpop.permute.xlu1 %1066  ;;  %v1145_v41 = vsel %vm906_vm7, %v1130_v42, %v1144_v49  ;;  %v1892_v49 = vld [vmem:[%s2167_s11 + $0x20] sm:$0xff] }
 0x3ed   : > { %v1138_v26 = vrot.slane %v1067_v52, %v2538_v57 }
 0x3ef   : > { %v1139_v4 = vsel %vm831_vm1, %v1138_v26, %v1134_v62  ;;  %v1891_v62 = vld [vmem:[%s2167_s11 + $0x28] sm:$0xff] }
 0x3f0   : > { %v1146_v43 = vsel %vm908_vm8, %v1139_v4, %v1145_v41  ;;  %v1893_v41 = vld [vmem:[%s2167_s11 + $0x38] sm:$0xff] }
 0x3f1   : > { %v1148_v3 = vsel %vm911_vm9, %v1146_v43, 0.0 }
 0x3f2   : > { %1149 = vadd.xlane.f32.xlu0 %v1148_v3 }
 0x47f   : > { %v1150_v58 = vpop.xlane.xlu0 %1149 }
 0x480   : > { %v1171_v39 = vrot.slane %v1150_v58, %v934_v1  ;;  %v1155_v31 = vrot.slane %v1150_v58, %v918_v20  ;;  %v1183_v8 = vrot.slane %v1150_v58, %v946_v36  ;;  %v1159_v12 = vrot.slane %v1150_v58, %v922_v35 }
 0x481   : > { %v1163_v1 = vrot.slane %v1150_v58, %v926_v34  ;;  %v1167_v35 = vrot.slane %v1150_v58, %v930_v19 }
 0x482   : > { %1871 = vrcp.f32 %v1171_v39 }
 0x483   : > { %1873 = vrcp.f32 %v1155_v31 }
 0x484   : > { %1875 = vrcp.f32 %v1183_v8  ;;  %v1894_v8 = vld [vmem:[%s2167_s11 + $0x30] sm:$0xff] }
 0x485   : > { %1877 = vrcp.f32 %v1159_v12 }
 0x486   : > { %1879 = vrcp.f32 %v1163_v1 }
 0x487   : > { %1881 = vrcp.f32 %v1167_v35 }
 0x48c   : > { %v1872_v13 = vpop.eup %1871 }
 0x48d   : > { %v1874_v47 = vpop.eup %1873  ;;  %v1205_v56 = vmul.f32 %v1872_v13, %v2684_v51 }
 0x48e   : > { %v1876_v44 = vpop.eup %1875  ;;  %v1193_v20 = vmul.f32 %v1874_v47, %v2638_v21  ;;  %v1194_v48 = vmul.f32 %v1874_v47, %v2641_v23  ;;  %v1175_v23 = vrot.slane %v1150_v58, %v938_v27 }
 0x48f   : > { %1258 = vperm.xlu0 %1774, %v1205_v56   ;;  %v1214_v36 = vmul.f32 %v1876_v44, %v2670_v59  ;;  %v1878_v5 = vpop.eup %1877  ;;  %v1896_v56 = vld [vmem:[%s2167_s11 + $0x40] sm:$0xff] }
 0x490   : > { %1218 = vperm.xlu1 %1773, %v1193_v20   ;;  %v1196_v51 = vmul.f32 %v1878_v5, %v2647_v53  ;;  %v1197_v34 = vmul.f32 %v1878_v5, %v2653_v16  ;;  %v1880_v21 = vpop.eup %1879  ;;  %1883 = vrcp.f32 %v1175_v23  ;;  %v1179_v53 = vrot.slane %v1150_v58, %v942_v37  ;;  %v1897_v23 = vld [vmem:[%s2167_s11 + $0x70] sm:$0xff] }
 0x491   : > { %v1199_v32 = vmul.f32 %v1880_v21, %v2660_v2  ;;  %v1200_v59 = vmul.f32 %v1880_v21, %v2667_v18  ;;  %v1882_v14 = vpop.eup %1881  ;;  %v1206_v2 = vmul.f32 %v1872_v13, %v2687_v24  ;;  %v1895_v13 = vld [vmem:[%s2167_s11 + $0x48] sm:$0xff] }
 0x492   : > { %v1202_v19 = vmul.f32 %v1882_v14, %v2675_v25  ;;  %v1203_v16 = vmul.f32 %v1882_v14, %v2680_v55  ;;  %1885 = vrcp.f32 %v1179_v53  ;;  %v1215_v25 = vmul.f32 %v1876_v44, %v2696_v28  ;;  %v1898_v53 = vld [vmem:[%s2167_s11 + $0x50] sm:$0xff] }
 0x493   : > { %1288 = vperm.xlu0 %1774, %v1214_v36  }
 0x494   : > { %1223 = vperm.xlu1 %1773, %v1194_v48  }
 0x498   : > { %1228 = vperm.xlu1 %1773, %v1196_v51  }
 0x49a   : > { %v1884_v15 = vpop.eup %1883 }
 0x49b   : > { %v1208_v27 = vmul.f32 %v1884_v15, %v2656_v11  ;;  %v1209_v18 = vmul.f32 %v1884_v15, %v2690_v0 }
 0x49c   : > { %1233 = vperm.xlu1 %1773, %v1197_v34   ;;  %v1886_v60 = vpop.eup %1885 }
 0x49d   : > { %v1211_v50 = vmul.f32 %v1886_v60, %v2663_v7  ;;  %v1212_v37 = vmul.f32 %v1886_v60, %v2693_v45 }
 0x4a0   : > { %1238 = vperm.xlu1 %1773, %v1199_v32  }
 0x4a4   : > { %1243 = vperm.xlu1 %1773, %v1200_v59  }
 0x4a8   : > { %1248 = vperm.xlu1 %1773, %v1202_v19  }
 0x4ac   : > { %1253 = vperm.xlu1 %1773, %v1203_v16  }
 0x4b0   : > { %1263 = vperm.xlu1 %1773, %v1206_v2  }
 0x4b4   : > { %1268 = vperm.xlu1 %1773, %v1208_v27  }
 0x4b8   : > { %1273 = vperm.xlu1 %1773, %v1209_v18  }
 0x4bc   : > { %1278 = vperm.xlu1 %1773, %v1211_v50  }
 0x4c0   : > { %1283 = vperm.xlu1 %1773, %v1212_v37  }
 0x4c4   : > { %1293 = vperm.xlu1 %1773, %v1215_v25  }
 0x50e   : > { %v2789_v33 = vpop.permute.xlu0 %1258 }
 0x50f   : > { %v2763_v55 = vpop.permute.xlu1 %1218  ;;  %v1304_v1 = vmul.f32 %v1896_v56, %v2789_v33  ;;  %v1423_v2 = vrot.slane %v2789_v33, %v2541_v61  ;;  %v1901_v56 = vld [vmem:[%s2167_s11 + $0x68] sm:$0xff] }
 0x510   : > { %v1296_v28 = vmul.f32 %v1888_v6, %v2763_v55  ;;  %v1387_v15 = vrot.slane %v2763_v55, %v2541_v61 }
 0x511   : > { %v1348_v32 = vsel %vm230_vm0, %v1304_v1, 0.0 }
 0x512   : > { %v1312_v46 = vsel %vm230_vm0, %v1296_v28, 0.0  ;;  %v2808_v44 = vpop.permute.xlu0 %1288 }
 0x513   : > { %v2765_v11 = vpop.permute.xlu1 %1223  ;;  %v1310_v59 = vmul.f32 %v1897_v23, %v2808_v44  ;;  %v1450_v28 = vrot.slane %v2808_v44, %v2541_v61 }
 0x514   : > { %v1297_v45 = vmul.f32 %v1887_v30, %v2765_v11  ;;  %v1391_v37 = vrot.slane %v2765_v11, %v2538_v57  ;;  %v1899_v30 = vld [vmem:[%s2167_s11 + $0x58] sm:$0xff] }
 0x515   : > { %v2831_v6 = vsel %vm230_vm0, %v1310_v59, 0.0 }
 0x516   : > { %v1313_v40 = vsel %vm230_vm0, %v1297_v45, 0.0 }
 0x517   : > { %v2767_v24 = vpop.permute.xlu1 %1228  ;;  %v1314_v42 = vadd.f32 %v1313_v40, %v1312_v46 }
 0x518   : > { %v1298_v54 = vmul.f32 %v1890_v10, %v2767_v24 }
 0x519   : > { %v1315_v39 = vrot.slane %v1314_v42, 4 }
 0x51a   : > { %v1321_v26 = vsel %vm230_vm0, %v1298_v54, 0.0 }
 0x51b   : > { %v2769_v0 = vpop.permute.xlu1 %1233  ;;  %v1316_v34 = vadd.f32 %v1315_v39, %v1314_v42 }
 0x51c   : > { %v1299_v9 = vmul.f32 %v1889_v29, %v2769_v0  ;;  %v1400_v25 = vrot.slane %v2769_v0, %v2538_v57 }
 0x51d   : > { %v1317_v50 = vrot.slane %v1316_v34, 2 }
 0x51e   : > { %v1322_v52 = vsel %vm230_vm0, %v1299_v9, 0.0  ;;  %v1396_v9 = vrot.slane %v2767_v24, %v2541_v61 }
 0x51f   : > { %v2771_v17 = vpop.permute.xlu1 %1238  ;;  %v1323_v3 = vadd.f32 %v1322_v52, %v1321_v26  ;;  %v2843_v52 = vadd.f32 %v1317_v50, %v1316_v34 }
 0x520   : > { %v1300_v4 = vmul.f32 %v1892_v49, %v2771_v17  ;;  %v1405_v54 = vrot.slane %v2771_v17, %v2541_v61 }
 0x521   : > { %v1324_v48 = vrot.slane %v1323_v3, 4  ;;  %v1319_v44 = vrot.slane %v2843_v52, 1 }
 0x522   : > { %v1330_v20 = vsel %vm230_vm0, %v1300_v4, 0.0 }
 0x523   : > { %v2773_v7 = vpop.permute.xlu1 %1243  ;;  %v1325_v27 = vadd.f32 %v1324_v48, %v1323_v3  ;;  %v1900_v3 = vld [vmem:[%s2167_s11 + $0x60] sm:$0xff] }
 0x524   : > { %v1301_v63 = vmul.f32 %v1891_v62, %v2773_v7  ;;  %v1409_v55 = vrot.slane %v2773_v7, %v2538_v57  ;;  %v1392_v7 = vsel %vm831_vm1, %v1391_v37, %v1387_v15  ;;  %v1401_v62 = vsel %vm831_vm1, %v1400_v25, %v1396_v9 }
 0x525   : > { %v1326_v10 = vrot.slane %v1325_v27, 2 }
 0x526   : > { %v1331_v31 = vsel %vm230_vm0, %v1301_v63, 0.0  ;;  %v1410_v63 = vsel %vm831_vm1, %v1409_v55, %v1405_v54 }
 0x527   : > { %v2779_v22 = vpop.permute.xlu1 %1248  ;;  %v1332_v5 = vadd.f32 %v1331_v31, %v1330_v20  ;;  %v2856_v31 = vadd.f32 %v1326_v10, %v1325_v27 }
 0x528   : > { %v1302_v12 = vmul.f32 %v1894_v8, %v2779_v22  ;;  %v1414_v4 = vrot.slane %v2779_v22, %v2541_v61 }
 0x529   : > { %v1333_v18 = vrot.slane %v1332_v5, 4 }
 0x52a   : > { %v1339_v21 = vsel %vm230_vm0, %v1302_v12, 0.0 }
 0x52b   : > { %v2787_v38 = vpop.permute.xlu1 %1253  ;;  %v1334_v46 = vadd.f32 %v1333_v18, %v1332_v5  ;;  %v1328_v18 = vrot.slane %v2856_v31, 1 }
 0x52c   : > { %v1303_v43 = vmul.f32 %v1893_v41, %v2787_v38  ;;  %v1418_v24 = vrot.slane %v2787_v38, %v2538_v57  ;;  %v1456_v38 = vsel %vm896_vm2, %v1401_v62, %v1392_v7 }
 0x52d   : > { %v1335_v8 = vrot.slane %v1334_v46, 2  ;;  %v1457_v20 = vsel %vm898_vm3, %v1410_v63, %v1456_v38 }
 0x52e   : > { %v1340_v36 = vsel %vm230_vm0, %v1303_v43, 0.0 }
 0x52f   : > { %v2799_v58 = vpop.permute.xlu1 %1263  ;;  %v1341_v14 = vadd.f32 %v1340_v36, %v1339_v21 }
 0x530   : > { %v1305_v47 = vmul.f32 %v1895_v13, %v2799_v58  ;;  %v1427_v17 = vrot.slane %v2799_v58, %v2538_v57 }
 0x531   : > { %v1342_v29 = vrot.slane %v1341_v14, 4 }
 0x532   : > { %v1349_v35 = vsel %vm230_vm0, %v1305_v47, 0.0  ;;  %v1419_v47 = vsel %vm831_vm1, %v1418_v24, %v1414_v4  ;;  %v1428_v48 = vsel %vm831_vm1, %v1427_v17, %v1423_v2  ;;  %v1902_v2 = vld [vmem:[%s2167_s11 + $0x78] sm:$0xff] }
 0x533   : > { %v2813_v51 = vpop.permute.xlu1 %1268  ;;  %v1350_v19 = vadd.f32 %v1349_v35, %v1348_v32  ;;  %v1343_v26 = vadd.f32 %v1342_v29, %v1341_v14  ;;  %v1458_v32 = vsel %vm900_vm4, %v1419_v47, %v1457_v20 }
 0x534   : > { %v1306_v16 = vmul.f32 %v1898_v53, %v2813_v51  ;;  %v1432_v58 = vrot.slane %v2813_v51, %v2541_v61  ;;  %v1336_v53 = vadd.f32 %v1335_v8, %v1334_v46 }
 0x535   : > { %v1351_v40 = vrot.slane %v1350_v19, 4  ;;  %v1344_v36 = vrot.slane %v1343_v26, 2 }
 0x536   : > { %v1357_v11 = vsel %vm230_vm0, %v1306_v16, 0.0  ;;  %v1459_v16 = vsel %vm902_vm5, %v1428_v48, %v1458_v32 }
 0x537   : > { %v1274_v60 = vpop.permute.xlu1 %1273  ;;  %v1352_v41 = vadd.f32 %v1351_v40, %v1350_v19 }
 0x538   : > { %v1307_v45 = vmul.f32 %v1899_v30, %v1274_v60  ;;  %v1436_v43 = vrot.slane %v1274_v60, %v2538_v57  ;;  %v1345_v60 = vadd.f32 %v1344_v36, %v1343_v26 }
 0x539   : > { %v1353_v35 = vrot.slane %v1352_v41, 2 }
 0x53a   : > { %v1358_v0 = vsel %vm230_vm0, %v1307_v45, 0.0  ;;  %v1437_v34 = vsel %vm831_vm1, %v1436_v43, %v1432_v58 }
 0x53b   : > { %v1359_v33 = vadd.f32 %v1358_v0, %v1357_v11  ;;  %v1279_v42 = vpop.permute.xlu1 %1278  ;;  %v1460_v50 = vsel %vm904_vm6, %v1437_v34, %v1459_v16  ;;  %v1354_v25 = vadd.f32 %v1353_v35, %v1352_v41 }
 0x53c   : > { %v1308_v39 = vmul.f32 %v1900_v3, %v1279_v42  ;;  %v1441_v5 = vrot.slane %v1279_v42, %v2541_v61  ;;  %v1337_v61 = vrot.slane %v1336_v53, 1 }
 0x53d   : > { %v1360_v49 = vrot.slane %v1359_v33, 4 }
 0x53e   : > { %v1366_v21 = vsel %vm230_vm0, %v1308_v39, 0.0 }
 0x53f   : > { %v1361_v12 = vadd.f32 %v1360_v49, %v1359_v33  ;;  %v1284_v13 = vpop.permute.xlu1 %1283 }
 0x540   : > { %v1309_v22 = vmul.f32 %v1901_v56, %v1284_v13  ;;  %v1445_v1 = vrot.slane %v1284_v13, %v2538_v57 }
 0x541   : > { %v1362_v23 = vrot.slane %v1361_v12, 2 }
 0x542   : > { %v1367_v51 = vsel %vm230_vm0, %v1309_v22, 0.0  ;;  %v1446_v14 = vsel %vm831_vm1, %v1445_v1, %v1441_v5 }
 0x543   : > { %v1368_v59 = vadd.f32 %v1367_v51, %v1366_v21  ;;  %v1294_v19 = vpop.permute.xlu1 %1293  ;;  %v1461_v30 = vsel %vm906_vm7, %v1446_v14, %v1460_v50 }
 0x544   : > { %v1311_v15 = vmul.f32 %v1902_v2, %v1294_v19  ;;  %v1454_v27 = vrot.slane %v1294_v19, %v2538_v57  ;;  %v1363_v57 = vadd.f32 %v1362_v23, %v1361_v12 }
 0x545   : > { %v1369_v37 = vrot.slane %v1368_v59, 4 }
 0x546   : > { %v1376_v45 = vsel %vm230_vm0, %v1311_v15, 0.0  ;;  %v1455_v55 = vsel %vm831_vm1, %v1454_v27, %v1450_v28  ;;  %v1346_v28 = vrot.slane %v1345_v60, 1 }
 0x547   : > { %v1370_v29 = vadd.f32 %v1369_v37, %v1368_v59  ;;  %v1377_v9 = vadd.f32 %v1376_v45, %v2831_v6  ;;  %v1462_v40 = vsel %vm908_vm8, %v1455_v55, %v1461_v30 }
 0x548   : > { %1464 = vst.msk [vmem:[%s200_s7] sm:$0xff] %vm911_vm9, %v1462_v40 }
 0x549   : > { %v1371_v11 = vrot.slane %v1370_v29, 2  ;;  %v1378_v0 = vrot.slane %v1377_v9, 4 }
 0x54a   : > { %1946 = shalt.err (!%p1943_p2)
}
 0x54b   : > { %s1947_s28 = scalar_lea.hbm %s2892_s19, 128  ;;  %s1951_s9 = scalar_lea.hbm %s2986_s3, 256 }
 0x54c   : > { %p1948_p4 = scmp.ne.s32.totalorder %s2892_s19, %s1947_s28  ;;  %p1952_p9 = scmp.lt.u32.totalorder %s2892_s19, %s2986_s3 }
 0x54d   : > { %p1953_p1 = scmp.lt.u32.totalorder %s1951_s9, %s1947_s28  ;;  %p1955_p6 = scmp.lt.u32.totalorder %s1947_s28, %s2892_s19 }
 0x54e   : > { %p1949_p5 = pnand %p1948_p4, %p2993_p11 }
 0x54f   : > { %p1954_p3 = por %p1953_p1, %p1952_p9 }
 0x550   : > { %p1950_p7 = pneg %p1949_p5 }
 0x551   : > { %p1956_p12 = por %p1955_p6, %p1954_p3 }
 0x553   : > { %p1957_p13 = pnand %p1956_p12, %p1950_p7 }
 0x555   : > { %1960 = shalt.err (!%p1957_p13)
}
 0x556   : > { %1722 = dma.vmem_to_hbm [thread:$0]  (%p2993_p11), %s2894_s8, 128, %s2892_s19, %s1488_s20   ;;  %v1355_v6 = vrot.slane %v1354_v25, 1  ;;  %v1329_v10 = vadd.f32 %v1328_v18, %v2856_v31  ;;  %v1364_v54 = vrot.slane %v1363_v57, 1  ;;  %v1372_v46 = vadd.f32 %v1371_v11, %v1370_v29 }
 0x557   : > { %v1379_v33 = vadd.f32 %v1378_v0, %v1377_v9  ;;  %v1338_v42 = vadd.f32 %v1337_v61, %v1336_v53  ;;  %v1320_v7 = vadd.f32 %v1319_v44, %v2843_v52  ;;  %v1347_v62 = vadd.f32 %v1346_v28, %v1345_v60  ;;  %s193_s8 = scalar_lea.vmem [#allocation5], %s1625_s4  ;;  %s2937_s20 = scalar_lea.hbm %s2985_s2, %s1649_s6 }
 0x558   : > { %v1373_v24 = vrot.slane %v1372_v46, 1  ;;  %v1356_v26 = vadd.f32 %v1355_v6, %v1354_v25  ;;  %v1365_v49 = vadd.f32 %v1364_v54, %v1363_v57  ;;  %s1501_s11 = sshll.u32 %s193_s8, 4  ;;  %s1483_s4 = scalar_lea.sflag [#allocation4], %s2163_s5  ;;  %s2939_s11 = int_to_ptr.vmem [resolvable:$true] %s1501_s11 }
 0x559   : > { %v1380_v63 = vrot.slane %v1379_v33, 2  ;;  %v1473_v17 = vsel %vm896_vm2, %v1329_v10, %v1320_v7  ;;  %s1961_s23 = scalar_lea.vmem %s2939_s11, 128  ;;  %s2038_s16 = smov [#allocation5]  }
 0x55a   : > { %v1474_v41 = vsel %vm898_vm3, %v1338_v42, %v1473_v17  ;;  %v1374_v43 = vadd.f32 %v1373_v24, %v1372_v46  ;;  %p1962_p8 = scmp.ne.s32.totalorder %s2939_s11, %s1961_s23  ;;  %s1965_s22 = sshll.u32 %s2038_s16, 4  ;;  %s1966_s22 = int_to_ptr.vmem [resolvable:$false] %s1965_s22 }
 0x55b   : > { %v1381_v4 = vadd.f32 %v1380_v63, %v1379_v33  ;;  %v1475_v3 = vsel %vm900_vm4, %v1347_v62, %v1474_v41  ;;  %s1967_s6 = scalar_lea.vmem %s1966_s22, 256  ;;  %p1968_p2 = scmp.lt.s32.totalorder %s2939_s11, %s1966_s22 }
 0x55c   : > { %v1476_v52 = vsel %vm902_vm5, %v1356_v26, %v1475_v3  ;;  %p1963_p10 = pnand %p1962_p8, %p2993_p11  ;;  %p1969_p4 = scmp.lt.s32.totalorder %s1967_s6, %s1961_s23 }
 0x55d   : > { %v1382_v39 = vrot.slane %v1381_v4, 1  ;;  %v1477_v38 = vsel %vm904_vm6, %v1365_v49, %v1476_v52 }
 0x55e   : > { %v1478_v8 = vsel %vm906_vm7, %v1374_v43, %v1477_v38  ;;  %p1964_p0 = pneg %p1963_p10  ;;  %p1970_p5 = por %p1969_p4, %p1968_p2 }
 0x55f   : > { %v1383_v31 = vadd.f32 %v1382_v39, %v1381_v4 }
 0x560   : > { %p1971_p7 = pnand %p1970_p5, %p1964_p0 }
 0x561   : > { %v1479_v12 = vsel %vm908_vm8, %v1383_v31, %v1478_v8 }
 0x562   : > { %1481 = vst.msk [vmem:[%s193_s8] sm:$0xff] %vm230_vm0, %v1479_v12 }
 0x563   : > { %1974 = shalt.err (!%p1971_p7)
}
 0x564   : > { %s1975_s5 = scalar_lea.hbm %s2937_s20, 128  ;;  %s1979_s28 = scalar_lea.hbm %s2985_s2, 256 }
 0x565   : > { %p1976_p9 = scmp.ne.s32.totalorder %s2937_s20, %s1975_s5  ;;  %p1980_p6 = scmp.lt.u32.totalorder %s2937_s20, %s2985_s2 }
 0x566   : > { %p1981_p12 = scmp.lt.u32.totalorder %s1979_s28, %s1975_s5  ;;  %p1983_p8 = scmp.lt.u32.totalorder %s1975_s5, %s2937_s20 }
 0x567   : > { %p1977_p1 = pnand %p1976_p9, %p2993_p11 }
 0x568   : > { %p1982_p13 = por %p1981_p12, %p1980_p6 }
 0x569   : > { %p1978_p3 = pneg %p1977_p1 }
 0x56a   : > { %p1984_p10 = por %p1983_p8, %p1982_p13 }
 0x56c   : > { %p1985_p0 = pnand %p1984_p10, %p1978_p3 }
 0x56e   : > { %1988 = shalt.err (!%p1985_p0)
}
 0x56f   : > { %1721 = dma.vmem_to_hbm [thread:$0]  (%p2993_p11), %s2939_s11, 128, %s2937_s20, %s1483_s4  }
 0x570 PF: > { %s1526_s9 = sand.u32 1, %s2019_s12   ;;  %p2994_p2 = scmp.ne.s32.totalorder %s2991_s25, 0 }
 0x571   : > { %p2995_p4 = scmp.ge.s32.totalorder %s2031_s15, 2  ;;  %s1527_s10 = scalar_lea.sflag [#allocation4], %s1526_s9 }
 0x573   : > { %p1730_p5 = pnand %p2995_p4, %p2994_p2 }
 0x575   : > { %2010 = dma.done.wait (!%p1730_p5), %s1527_s10, 128  }
 0x576   : > { %2012 = vsyncadd (!%p1730_p5), %s1527_s10, 4294967168  ;;  %s1536_s7 = scalar_lea.sflag [#allocation7], %s1526_s9 }
 0x577   : > { %2014 = dma.done.wait (!%p1730_p5), %s1536_s7, 128  }
 0x578   : > { %2016 = vsyncadd (!%p1730_p5), %s1536_s7, 4294967168  ;;  %p20_p11 = scmp.ge.s32.totalorder %s2084_s18, 4   ;;  %s2996_s12 = smov %s2023_s13 }
 0x579   : > { %s2997_s13 = smov %s2027_s14  ;;  %s2998_s14 = smov %s2096_s21 }
 0x57a   : > { %s2999_s15 = smov %s2084_s18  ;;  %22 = sbr.rel (!%p20_p11) target bundleno = 7 (0x7), region = 90 }
 0x581   :  { %1541 = vsyncpa [#allocation3], 1 }
 0x582   :  { %1543 = vsyncpa [#allocation3 + $0x1], 1 }
 0x583   :  { %1544 = vsyncpa [#allocation4], 1 }
 0x584   :  { %1546 = vsyncpa [#allocation4 + $0x1], 1 }
 0x585   :  { %1547 = vsyncpa [#allocation7], 1 }
 0x586   :  { %1549 = vsyncpa [#allocation7 + $0x1], 1 }

</bundles_post_ra>
